<compile_context>
chip_gen: v6e
topology: v6e:2x2x1
jax: 0.10.0
libtpu: 0.0.40
codegen_flags: <defaults>
</compile_context>

<pallas_src>
import functools

import jax
import jax.numpy as jnp
from jax.experimental import pallas as pl
from jax.experimental.pallas import tpu as pltpu

LANE = 128          # channel / lane alignment
N_ALIGN = 256       # node-count alignment (MXU-aligned on all generations)
ROW_TILE = 256      # G row-tile height (v6e could use 512-1024; 256 is safe everywhere)


def _round_up(n, m):
    return ((n + m - 1) // m) * m


def _pad2(a, rows, cols):
    out = jnp.zeros((rows, cols), a.dtype)
    return out.at[: a.shape[0], : a.shape[1]].set(a)


# ----------------------------- fused Pallas kernel ---------------------------

def _pdhgnnp_kernel(x_ref, pd_ref, g_ref,
                    tw1_ref, tb1_ref, tw2_ref, tb2_ref,
                    w_ref, b_ref, wt_ref, bt_ref,
                    x_out_ref, topo_out_ref,
                    x_cur, xw_s, topo_s):
    """Grid = (num_layers, row_tiles).  G is streamed in row tiles; x / xw / topo
    live in VMEM scratch across all grid steps."""
    l = pl.program_id(0)
    r = pl.program_id(1)
    tm = g_ref.shape[0]

    # ----- one-time init: topology branch MLP + load x into the carried scratch.
    @pl.when(jnp.logical_and(l == 0, r == 0))
    def _init():
        h = jnp.dot(pd_ref[...].astype(jnp.bfloat16), tw1_ref[...],
                    preferred_element_type=jnp.float32) + tb1_ref[...]
        h = jnp.maximum(h, 0.0)
        topo_s[...] = jnp.dot(h.astype(jnp.bfloat16), tw2_ref[...],
                              preferred_element_type=jnp.float32) + tb2_ref[...]
        x_cur[...] = x_ref[...]

    # ----- once per layer: theta (linear) on the full carried x, and the
    #       topology_linear update.  Both small (N x C x C) matmuls, bf16 x bf16.
    @pl.when(r == 0)
    def _per_layer():
        xw = jnp.dot(x_cur[...].astype(jnp.bfloat16), w_ref[...],
                     preferred_element_type=jnp.float32) + b_ref[...]
        xw_s[...] = xw.astype(jnp.bfloat16)
        topo_s[...] = jnp.dot(topo_s[...].astype(jnp.bfloat16), wt_ref[...],
                              preferred_element_type=jnp.float32) + bt_ref[...]
        topo_out_ref[...] = topo_s[...]

    # ----- per row tile: hypergraph mean smoothing + ReLU + topo gating.
    #       (Padded columns of G are zero, which neutralizes the nonzero bias
    #        rows of xw in the padded node range.)
    xs = jnp.dot(g_ref[...], xw_s[...], preferred_element_type=jnp.float32)
    xs = jnp.maximum(xs, 0.0)

    row0 = pl.multiple_of(r * tm, tm)
    topo_rows = topo_s[pl.ds(row0, tm), :]
    # x = relu(x + x * dropout(topo));  dropout = identity in eval mode.
    x_new = jnp.maximum(xs + xs * topo_rows, 0.0)

    x_out_ref[...] = x_new                       # last layer's write wins in HBM
    x_cur[pl.ds(row0, tm), :] = x_new            # carry into the next layer's theta


# --------------------------------- wrapper -----------------------------------

def pdhgnnp_forward(x, g, pd, packed, hidden_channels):
    n = x.shape[0]
    cp = packed["w"].shape[-1]                 # padded channel width (multiple of 128)
    pdp = packed["tw1"].shape[0]               # padded PD-feature width
    num_layers = packed["w"].shape[0]

    n_p = _round_up(n, max(N_ALIGN, ROW_TILE))
    tm = ROW_TILE
    row_tiles = n_p // tm

    x_p = _pad2(x.astype(jnp.float32), n_p, cp)
    pd_p = _pad2(pd.astype(jnp.float32), n_p, pdp)
    g_p = _pad2(g.astype(jnp.bfloat16), n_p, n_p)    # cast BEFORE pad: bf16 padding traffic

    # ---- cost estimate ----
    flops = (2 * n_p * pdp * cp + 2 * n_p * cp * cp
             + num_layers * (4 * n_p * cp * cp + 2 * n_p * n_p * cp))
    operands = (x_p, pd_p, g_p,
                packed["tw1"], packed["tb1"], packed["tw2"], packed["tb2"],
                packed["w"], packed["b"], packed["wt"], packed["bt"])
    bytes_accessed = sum(int(o.size) * o.dtype.itemsize for o in operands)
    bytes_accessed += (num_layers - 1) * n_p * n_p * 2     # G is re-read once per layer
    bytes_accessed += (num_layers + 1) * n_p * cp * 4      # x_out writebacks + topo_out

    # ---- explicit VMEM budget (resident footprint + headroom) ----
    vmem_needed = (
        2 * tm * n_p * 2                       # double-buffered bf16 G row tile
        + n_p * cp * 4 + n_p * pdp * 4         # resident x, pd inputs
        + (pdp * cp + cp * cp) * 2 + 2 * cp * 4          # topo-MLP weights (bf16) + biases
        + 2 * (2 * cp * cp * 2 + 2 * cp * 4)             # streamed per-layer w/wt/b/bt (x2 buf)
        + 2 * tm * cp * 4 + n_p * cp * 4                 # x_out tile (x2 buf) + topo_out
        + n_p * cp * (4 + 2 + 4)                         # scratch: x_cur f32, xw bf16, topo f32
    )
    vmem_limit = int(min(max(1.5 * vmem_needed, 32 * 1024 * 1024), 64 * 1024 * 1024))

    grid_spec = pltpu.PrefetchScalarGridSpec(
        num_scalar_prefetch=0,
        grid=(num_layers, row_tiles),
        in_specs=[
            pl.BlockSpec((n_p, cp), lambda l, r: (0, 0)),          # x (resident)
            pl.BlockSpec((n_p, pdp), lambda l, r: (0, 0)),         # pd (resident)
            pl.BlockSpec((tm, n_p), lambda l, r: (r, 0)),          # G row tile (streamed)
            pl.BlockSpec((pdp, cp), lambda l, r: (0, 0)),          # tw1
            pl.BlockSpec((1, cp), lambda l, r: (0, 0)),            # tb1
            pl.BlockSpec((cp, cp), lambda l, r: (0, 0)),           # tw2
            pl.BlockSpec((1, cp), lambda l, r: (0, 0)),            # tb2
            pl.BlockSpec((None, cp, cp), lambda l, r: (l, 0, 0)),  # w  (per-layer stream)
            pl.BlockSpec((None, 1, cp), lambda l, r: (l, 0, 0)),   # b
            pl.BlockSpec((None, cp, cp), lambda l, r: (l, 0, 0)),  # wt
            pl.BlockSpec((None, 1, cp), lambda l, r: (l, 0, 0)),   # bt
        ],
        out_specs=[
            pl.BlockSpec((tm, cp), lambda l, r: (r, 0)),           # x_out (row tile)
            pl.BlockSpec((n_p, cp), lambda l, r: (0, 0)),          # topo_out (resident)
        ],
        scratch_shapes=[
            pltpu.VMEM((n_p, cp), jnp.float32),    # x carried across layers
            pltpu.VMEM((n_p, cp), jnp.bfloat16),   # xw = theta(x) for current layer
            pltpu.VMEM((n_p, cp), jnp.float32),    # topo carried across layers
        ],
    )

    x_out, topo_out = pl.pallas_call(
        _pdhgnnp_kernel,
        out_shape=(jax.ShapeDtypeStruct((n_p, cp), jnp.float32),
                   jax.ShapeDtypeStruct((n_p, cp), jnp.float32)),
        grid_spec=grid_spec,
        compiler_params=pltpu.CompilerParams(
            dimension_semantics=("arbitrary", "arbitrary"),
            vmem_limit_bytes=vmem_limit),
        cost_estimate=pl.CostEstimate(flops=flops, transcendentals=0,
                                      bytes_accessed=bytes_accessed),
    )(*operands)
    return x_out[:n, :hidden_channels], topo_out[:n, :hidden_channels]


# -------------------------- parameter construction ---------------------------

def _linear_init(key, fan_in, fan_out):
    """PyTorch nn.Linear-style init: U(-1/sqrt(fan_in), 1/sqrt(fan_in))."""
    kw, kb = jax.random.split(key)
    bound = 1.0 / jnp.sqrt(float(fan_in))
    w = jax.random.uniform(kw, (fan_in, fan_out), jnp.float32, -bound, bound)
    b = jax.random.uniform(kb, (1, fan_out), jnp.float32, -bound, bound)
    return w, b


def make_params(input_channels, hidden_channels, num_layers, seed=403):
    key = jax.random.PRNGKey(seed)
    keys = jax.random.split(key, 2 + 2 * num_layers)
    # topology branch: Linear(5, C_in) -> ReLU -> Linear(C_in, C_in)
    tw1, tb1 = _linear_init(keys[0], 5, input_channels)
    tw2, tb2 = _linear_init(keys[1], input_channels, input_channels)
    layers = []
    for i in range(num_layers):
        c_in = input_channels if i == 0 else hidden_channels
        w, b = _linear_init(keys[2 + 2 * i], c_in, hidden_channels)      # HGNNPConv.theta
        wt, bt = _linear_init(keys[3 + 2 * i], c_in, hidden_channels)    # topology_linear
        layers.append((w, b, wt, bt))
    return {"topo": (tw1, tb1, tw2, tb2), "layers": layers}


def pack_params(raw):
    """Zero-pad every weight to lane-dense widths, cast weights to bf16, stack per-layer."""
    tw1, tb1, tw2, tb2 = raw["topo"]
    c_in = tw1.shape[1]
    c_hid = raw["layers"][0][0].shape[1]
    cp = _round_up(max(c_in, c_hid), LANE)
    pdp = _round_up(tw1.shape[0], LANE)
    bf = jnp.bfloat16
    return {
        "tw1": _pad2(tw1.astype(bf), pdp, cp), "tb1": _pad2(tb1, 1, cp),
        "tw2": _pad2(tw2.astype(bf), cp, cp),  "tb2": _pad2(tb2, 1, cp),
        "w":  jnp.stack([_pad2(w.astype(bf),  cp, cp) for (w, _, _, _) in raw["layers"]]),
        "b":  jnp.stack([_pad2(b,             1,  cp) for (_, b, _, _) in raw["layers"]]),
        "wt": jnp.stack([_pad2(wt.astype(bf), cp, cp) for (_, _, wt, _) in raw["layers"]]),
        "bt": jnp.stack([_pad2(bt,            1,  cp) for (_, _, _, bt) in raw["layers"]]),
    }


# ----------------------------- pure-JAX reference ----------------------------

def pdhgnnp_reference(x, g, pd, raw):
    tw1, tb1, tw2, tb2 = raw["topo"]
    topo = jnp.maximum(pd @ tw1 + tb1, 0.0) @ tw2 + tb2
    for w, b, wt, bt in raw["layers"]:
        xs = jnp.maximum(g @ (x @ w + b), 0.0)
        topo = topo @ wt + bt
        x = jnp.maximum(xs + xs * topo, 0.0)
    return x, topo


# ----------------------------------- main -------------------------------------

if __name__ == "__main__":
    N_NODES = 16          # hypergraph vertices
    N_EDGES = 8           # hyperedges
    C_IN = 32             # input_channels
    C_HID = 32            # hidden_channels
    NUM_LAYERS = 3

    key = jax.random.PRNGKey(0)
    kx, kpd, kh = jax.random.split(key, 3)

    x = jax.random.normal(kx, (N_NODES, C_IN), jnp.float32)        # node features
    pd = jax.random.normal(kpd, (N_NODES, 5), jnp.float32)         # per-node topological (PD) features

    # Random hypergraph incidence matrix H (N, E); every vertex/hyperedge has degree >= 1.
    H = (jax.random.uniform(kh, (N_NODES, N_EDGES)) < 0.3).astype(jnp.float32)
    H = H.at[jnp.arange(N_NODES), jnp.arange(N_NODES) % N_EDGES].set(1.0)
    Dv = H.sum(axis=1)
    De = H.sum(axis=0)
    # G = Dv^-1 H De^-1 H^T  (mean v2e then mean e2v, as in hg.v2v(aggr="mean"))
    G = (H / Dv[:, None]) @ (H / De[None, :]).T

    raw = make_params(C_IN, C_HID, NUM_LAYERS)
    packed = pack_params(raw)

    fwd = jax.jit(functools.partial(pdhgnnp_forward, hidden_channels=C_HID))
    x_out, topo_out = jax.block_until_ready(fwd(x, G, pd, packed))

    x_ref, topo_ref = pdhgnnp_reference(x, G, pd, raw)

    assert x_out.shape == (N_NODES, C_HID)
    assert topo_out.shape == (N_NODES, C_HID)
    assert bool(jnp.all(jnp.isfinite(x_out))) and bool(jnp.all(jnp.isfinite(topo_out)))
    # Loose tolerance: G and all dense weights run in bf16 (f32 accumulation) inside the kernel.
    assert bool(jnp.allclose(x_out, x_ref, rtol=5e-2, atol=7.5e-2)), \
        float(jnp.max(jnp.abs(x_out - x_ref)))
    assert bool(jnp.allclose(topo_out, topo_ref, rtol=5e-2, atol=7.5e-2)), \
        float(jnp.max(jnp.abs(topo_out - topo_ref)))
    print("KERNEL_OK")
</pallas_src>

<mosaic_0001>
module attributes {stable_mosaic.version = 11 : i64} {
  func.func @_pdhgnnp_kernel(%arg0: i32, %arg1: i32, %arg2: memref<256x128xf32, #tpu.memory_space<vmem>>, %arg3: memref<256x128xf32, #tpu.memory_space<vmem>>, %arg4: memref<256x256xbf16, #tpu.memory_space<vmem>>, %arg5: memref<128x128xbf16, #tpu.memory_space<vmem>>, %arg6: memref<1x128xf32, #tpu.memory_space<vmem>>, %arg7: memref<128x128xbf16, #tpu.memory_space<vmem>>, %arg8: memref<1x128xf32, #tpu.memory_space<vmem>>, %arg9: memref<1x128x128xbf16, #tpu.memory_space<vmem>>, %arg10: memref<1x1x128xf32, #tpu.memory_space<vmem>>, %arg11: memref<1x128x128xbf16, #tpu.memory_space<vmem>>, %arg12: memref<1x1x128xf32, #tpu.memory_space<vmem>>, %arg13: memref<256x128xf32, #tpu.memory_space<vmem>>, %arg14: memref<256x128xf32, #tpu.memory_space<vmem>>, %arg15: memref<256x128xf32, #tpu.memory_space<vmem>>, %arg16: memref<256x128xbf16, #tpu.memory_space<vmem>>, %arg17: memref<256x128xf32, #tpu.memory_space<vmem>>) attributes {dimension_semantics = [#tpu.dimension_semantics<arbitrary>, #tpu.dimension_semantics<arbitrary>], iteration_bounds = array<i64: 3, 1>, scalar_prefetch = 0 : i64, scratch_operands = 3 : i64, tpu.core_type = #tpu.core_type<tc>, window_params = [{pipeline_mode = #tpu.pipeline_mode<synchronous>, transform_indices = @transform_0, window_bounds = array<i64: 256, 128>}, {pipeline_mode = #tpu.pipeline_mode<synchronous>, transform_indices = @transform_1, window_bounds = array<i64: 256, 128>}, {transform_indices = @transform_2, window_bounds = array<i64: 256, 256>}, {pipeline_mode = #tpu.pipeline_mode<synchronous>, transform_indices = @transform_3, window_bounds = array<i64: 128, 128>}, {pipeline_mode = #tpu.pipeline_mode<synchronous>, transform_indices = @transform_4, window_bounds = array<i64: 1, 128>}, {pipeline_mode = #tpu.pipeline_mode<synchronous>, transform_indices = @transform_5, window_bounds = array<i64: 128, 128>}, {pipeline_mode = #tpu.pipeline_mode<synchronous>, transform_indices = @transform_6, window_bounds = array<i64: 1, 128>}, {transform_indices = @transform_7, window_bounds = array<i64: 1, 128, 128>}, {transform_indices = @transform_8, window_bounds = array<i64: 1, 1, 128>}, {transform_indices = @transform_9, window_bounds = array<i64: 1, 128, 128>}, {transform_indices = @transform_10, window_bounds = array<i64: 1, 1, 128>}, {transform_indices = @transform_11, window_bounds = array<i64: 256, 128>}, {pipeline_mode = #tpu.pipeline_mode<synchronous>, transform_indices = @transform_12, window_bounds = array<i64: 256, 128>}]} {
    %c0_i32 = arith.constant 0 : i32
    %0 = arith.cmpi eq, %arg0, %c0_i32 : i32
    %c0_i32_0 = arith.constant 0 : i32
    %1 = arith.cmpi eq, %arg1, %c0_i32_0 : i32
    %2 = arith.andi %0, %1 : i1
    %3 = arith.extui %2 : i1 to i32
    %c0_i32_1 = arith.constant 0 : i32
    %4 = arith.cmpi ne, %3, %c0_i32_1 : i32
    scf.if %4 {
      %c0_13 = arith.constant 0 : index
      %c0_14 = arith.constant 0 : index
      %24 = vector.load %arg3[%c0_13, %c0_14] : memref<256x128xf32, #tpu.memory_space<vmem>>, vector<256x128xf32>
      %25 = arith.truncf %24 : vector<256x128xf32> to vector<256x128xbf16>
      %c0_15 = arith.constant 0 : index
      %c0_16 = arith.constant 0 : index
      %26 = vector.load %arg5[%c0_15, %c0_16] : memref<128x128xbf16, #tpu.memory_space<vmem>>, vector<128x128xbf16>
      %cst_17 = arith.constant dense<0.000000e+00> : vector<256x128xf32>
      %27 = tpu.matmul %25, %26, %cst_17 {dimension_numbers = #tpu.dot_dimension_numbers<[1], [0], [0], [1], [0, 0, 1, 1], [], []>} : vector<256x128xbf16>, vector<128x128xbf16>, vector<256x128xf32> -> vector<256x128xf32>
      %c0_18 = arith.constant 0 : index
      %c0_19 = arith.constant 0 : index
      %28 = vector.load %arg6[%c0_18, %c0_19] : memref<1x128xf32, #tpu.memory_space<vmem>>, vector<1x128xf32>
      %29 = vector.broadcast %28 : vector<1x128xf32> to vector<256x128xf32>
      %30 = arith.addf %27, %29 : vector<256x128xf32>
      %cst_20 = arith.constant 0.000000e+00 : f32
      %31 = vector.broadcast %cst_20 : f32 to vector<256x128xf32>
      %32 = arith.maximumf %30, %31 : vector<256x128xf32>
      %33 = arith.truncf %32 : vector<256x128xf32> to vector<256x128xbf16>
      %c0_21 = arith.constant 0 : index
      %c0_22 = arith.constant 0 : index
      %34 = vector.load %arg7[%c0_21, %c0_22] : memref<128x128xbf16, #tpu.memory_space<vmem>>, vector<128x128xbf16>
      %cst_23 = arith.constant dense<0.000000e+00> : vector<256x128xf32>
      %35 = tpu.matmul %33, %34, %cst_23 {dimension_numbers = #tpu.dot_dimension_numbers<[1], [0], [0], [1], [0, 0, 1, 1], [], []>} : vector<256x128xbf16>, vector<128x128xbf16>, vector<256x128xf32> -> vector<256x128xf32>
      %c0_24 = arith.constant 0 : index
      %c0_25 = arith.constant 0 : index
      %36 = vector.load %arg8[%c0_24, %c0_25] : memref<1x128xf32, #tpu.memory_space<vmem>>, vector<1x128xf32>
      %37 = vector.broadcast %36 : vector<1x128xf32> to vector<256x128xf32>
      %38 = arith.addf %35, %37 : vector<256x128xf32>
      %c0_26 = arith.constant 0 : index
      %c0_27 = arith.constant 0 : index
      %39 = vector.load %arg17[%c0_26, %c0_27] : memref<256x128xf32, #tpu.memory_space<vmem>>, vector<256x128xf32>
      tpu.vector_store %arg17[%c0_26, %c0_27], %38 {strides = array<i32>} : memref<256x128xf32, #tpu.memory_space<vmem>>, vector<256x128xf32>,
      %c0_28 = arith.constant 0 : index
      %c0_29 = arith.constant 0 : index
      %40 = vector.load %arg2[%c0_28, %c0_29] : memref<256x128xf32, #tpu.memory_space<vmem>>, vector<256x128xf32>
      %c0_30 = arith.constant 0 : index
      %c0_31 = arith.constant 0 : index
      %41 = vector.load %arg15[%c0_30, %c0_31] : memref<256x128xf32, #tpu.memory_space<vmem>>, vector<256x128xf32>
      tpu.vector_store %arg15[%c0_30, %c0_31], %40 {strides = array<i32>} : memref<256x128xf32, #tpu.memory_space<vmem>>, vector<256x128xf32>,
    } else {
    }
    %c0_i32_2 = arith.constant 0 : i32
    %5 = arith.cmpi eq, %arg1, %c0_i32_2 : i32
    %6 = arith.extui %5 : i1 to i32
    %c0_i32_3 = arith.constant 0 : i32
    %7 = arith.cmpi ne, %6, %c0_i32_3 : i32
    scf.if %7 {
      %c0_13 = arith.constant 0 : index
      %c0_14 = arith.constant 0 : index
      %24 = vector.load %arg15[%c0_13, %c0_14] : memref<256x128xf32, #tpu.memory_space<vmem>>, vector<256x128xf32>
      %25 = arith.truncf %24 : vector<256x128xf32> to vector<256x128xbf16>
      %c0_15 = arith.constant 0 : index
      %c0_16 = arith.constant 0 : index
      %c0_17 = arith.constant 0 : index
      %26 = vector.load %arg9[%c0_15, %c0_16, %c0_17] : memref<1x128x128xbf16, #tpu.memory_space<vmem>>, vector<1x128x128xbf16>
      %27 = vector.shape_cast %26 : vector<1x128x128xbf16> to vector<128x128xbf16>
      %cst_18 = arith.constant dense<0.000000e+00> : vector<256x128xf32>
      %28 = tpu.matmul %25, %27, %cst_18 {dimension_numbers = #tpu.dot_dimension_numbers<[1], [0], [0], [1], [0, 0, 1, 1], [], []>} : vector<256x128xbf16>, vector<128x128xbf16>, vector<256x128xf32> -> vector<256x128xf32>
      %c0_19 = arith.constant 0 : index
      %c0_20 = arith.constant 0 : index
      %c0_21 = arith.constant 0 : index
      %29 = vector.load %arg10[%c0_19, %c0_20, %c0_21] : memref<1x1x128xf32, #tpu.memory_space<vmem>>, vector<1x1x128xf32>
      %30 = vector.shape_cast %29 : vector<1x1x128xf32> to vector<1x128xf32>
      %31 = vector.broadcast %30 : vector<1x128xf32> to vector<256x128xf32>
      %32 = arith.addf %28, %31 : vector<256x128xf32>
      %33 = arith.truncf %32 : vector<256x128xf32> to vector<256x128xbf16>
      %c0_22 = arith.constant 0 : index
      %c0_23 = arith.constant 0 : index
      %34 = vector.load %arg16[%c0_22, %c0_23] : memref<256x128xbf16, #tpu.memory_space<vmem>>, vector<256x128xbf16>
      tpu.vector_store %arg16[%c0_22, %c0_23], %33 {strides = array<i32>} : memref<256x128xbf16, #tpu.memory_space<vmem>>, vector<256x128xbf16>,
      %c0_24 = arith.constant 0 : index
      %c0_25 = arith.constant 0 : index
      %35 = vector.load %arg17[%c0_24, %c0_25] : memref<256x128xf32, #tpu.memory_space<vmem>>, vector<256x128xf32>
      %36 = arith.truncf %35 : vector<256x128xf32> to vector<256x128xbf16>
      %c0_26 = arith.constant 0 : index
      %c0_27 = arith.constant 0 : index
      %c0_28 = arith.constant 0 : index
      %37 = vector.load %arg11[%c0_26, %c0_27, %c0_28] : memref<1x128x128xbf16, #tpu.memory_space<vmem>>, vector<1x128x128xbf16>
      %38 = vector.shape_cast %37 : vector<1x128x128xbf16> to vector<128x128xbf16>
      %cst_29 = arith.constant dense<0.000000e+00> : vector<256x128xf32>
      %39 = tpu.matmul %36, %38, %cst_29 {dimension_numbers = #tpu.dot_dimension_numbers<[1], [0], [0], [1], [0, 0, 1, 1], [], []>} : vector<256x128xbf16>, vector<128x128xbf16>, vector<256x128xf32> -> vector<256x128xf32>
      %c0_30 = arith.constant 0 : index
      %c0_31 = arith.constant 0 : index
      %c0_32 = arith.constant 0 : index
      %40 = vector.load %arg12[%c0_30, %c0_31, %c0_32] : memref<1x1x128xf32, #tpu.memory_space<vmem>>, vector<1x1x128xf32>
      %41 = vector.shape_cast %40 : vector<1x1x128xf32> to vector<1x128xf32>
      %42 = vector.broadcast %41 : vector<1x128xf32> to vector<256x128xf32>
      %43 = arith.addf %39, %42 : vector<256x128xf32>
      %c0_33 = arith.constant 0 : index
      %c0_34 = arith.constant 0 : index
      %44 = vector.load %arg17[%c0_33, %c0_34] : memref<256x128xf32, #tpu.memory_space<vmem>>, vector<256x128xf32>
      tpu.vector_store %arg17[%c0_33, %c0_34], %43 {strides = array<i32>} : memref<256x128xf32, #tpu.memory_space<vmem>>, vector<256x128xf32>,
      %c0_35 = arith.constant 0 : index
      %c0_36 = arith.constant 0 : index
      %45 = vector.load %arg17[%c0_35, %c0_36] : memref<256x128xf32, #tpu.memory_space<vmem>>, vector<256x128xf32>
      %c0_37 = arith.constant 0 : index
      %c0_38 = arith.constant 0 : index
      %46 = vector.load %arg14[%c0_37, %c0_38] : memref<256x128xf32, #tpu.memory_space<vmem>>, vector<256x128xf32>
      tpu.vector_store %arg14[%c0_37, %c0_38], %45 {strides = array<i32>} : memref<256x128xf32, #tpu.memory_space<vmem>>, vector<256x128xf32>,
    } else {
    }
    %c0 = arith.constant 0 : index
    %c0_4 = arith.constant 0 : index
    %8 = vector.load %arg4[%c0, %c0_4] : memref<256x256xbf16, #tpu.memory_space<vmem>>, vector<256x256xbf16>
    %c0_5 = arith.constant 0 : index
    %c0_6 = arith.constant 0 : index
    %9 = vector.load %arg16[%c0_5, %c0_6] : memref<256x128xbf16, #tpu.memory_space<vmem>>, vector<256x128xbf16>
    %cst = arith.constant dense<0.000000e+00> : vector<256x128xf32>
    %10 = tpu.matmul %8, %9, %cst {dimension_numbers = #tpu.dot_dimension_numbers<[1], [0], [0], [1], [0, 0, 1, 1], [], []>} : vector<256x256xbf16>, vector<256x128xbf16>, vector<256x128xf32> -> vector<256x128xf32>
    %cst_7 = arith.constant 0.000000e+00 : f32
    %11 = vector.broadcast %cst_7 : f32 to vector<256x128xf32>
    %12 = arith.maximumf %10, %11 : vector<256x128xf32>
    %c256_i32 = arith.constant 256 : i32
    %13 = arith.muli %arg1, %c256_i32 : i32
    %14 = tpu.assume_multiple %13, 256 : i32
    %15 = arith.index_cast %14 : i32 to index
    %c0_8 = arith.constant 0 : index
    %16 = vector.load %arg17[%15, %c0_8] : memref<256x128xf32, #tpu.memory_space<vmem>>, vector<256x128xf32>
    %17 = arith.mulf %12, %16 : vector<256x128xf32>
    %18 = arith.addf %12, %17 : vector<256x128xf32>
    %cst_9 = arith.constant 0.000000e+00 : f32
    %19 = vector.broadcast %cst_9 : f32 to vector<256x128xf32>
    %20 = arith.maximumf %18, %19 : vector<256x128xf32>
    %c0_10 = arith.constant 0 : index
    %c0_11 = arith.constant 0 : index
    %21 = vector.load %arg13[%c0_10, %c0_11] : memref<256x128xf32, #tpu.memory_space<vmem>>, vector<256x128xf32>
    tpu.vector_store %arg13[%c0_10, %c0_11], %20 {strides = array<i32>} : memref<256x128xf32, #tpu.memory_space<vmem>>, vector<256x128xf32>,
    %22 = arith.index_cast %14 : i32 to index
    %c0_12 = arith.constant 0 : index
    %23 = vector.load %arg15[%22, %c0_12] : memref<256x128xf32, #tpu.memory_space<vmem>>, vector<256x128xf32>
    tpu.vector_store %arg15[%22, %c0_12], %20 {strides = array<i32>} : memref<256x128xf32, #tpu.memory_space<vmem>>, vector<256x128xf32>,
    return
  }
  func.func @transform_0(%arg0: i32, %arg1: i32) -> (i32, i32) {
    %c0_i32 = arith.constant 0 : i32
    %c0_i32_0 = arith.constant 0 : i32
    %c0_i32_1 = arith.constant 0 : i32
    return %c0_i32, %c0_i32_0 : i32, i32
  }
  func.func @transform_1(%arg0: i32, %arg1: i32) -> (i32, i32) {
    %c0_i32 = arith.constant 0 : i32
    %c0_i32_0 = arith.constant 0 : i32
    %c0_i32_1 = arith.constant 0 : i32
    return %c0_i32, %c0_i32_0 : i32, i32
  }
  func.func @transform_2(%arg0: i32, %arg1: i32) -> (i32, i32) {
    %c0_i32 = arith.constant 0 : i32
    %c0_i32_0 = arith.constant 0 : i32
    return %arg1, %c0_i32 : i32, i32
  }
  func.func @transform_3(%arg0: i32, %arg1: i32) -> (i32, i32) {
    %c0_i32 = arith.constant 0 : i32
    %c0_i32_0 = arith.constant 0 : i32
    %c0_i32_1 = arith.constant 0 : i32
    return %c0_i32, %c0_i32_0 : i32, i32
  }
  func.func @transform_4(%arg0: i32, %arg1: i32) -> (i32, i32) {
    %c0_i32 = arith.constant 0 : i32
    %c0_i32_0 = arith.constant 0 : i32
    %c0_i32_1 = arith.constant 0 : i32
    return %c0_i32, %c0_i32_0 : i32, i32
  }
  func.func @transform_5(%arg0: i32, %arg1: i32) -> (i32, i32) {
    %c0_i32 = arith.constant 0 : i32
    %c0_i32_0 = arith.constant 0 : i32
    %c0_i32_1 = arith.constant 0 : i32
    return %c0_i32, %c0_i32_0 : i32, i32
  }
  func.func @transform_6(%arg0: i32, %arg1: i32) -> (i32, i32) {
    %c0_i32 = arith.constant 0 : i32
    %c0_i32_0 = arith.constant 0 : i32
    %c0_i32_1 = arith.constant 0 : i32
    return %c0_i32, %c0_i32_0 : i32, i32
  }
  func.func @transform_7(%arg0: i32, %arg1: i32) -> (i32, i32, i32) {
    %c0_i32 = arith.constant 0 : i32
    %c0_i32_0 = arith.constant 0 : i32
    %c0_i32_1 = arith.constant 0 : i32
    return %arg0, %c0_i32, %c0_i32_0 : i32, i32, i32
  }
  func.func @transform_8(%arg0: i32, %arg1: i32) -> (i32, i32, i32) {
    %c0_i32 = arith.constant 0 : i32
    %c0_i32_0 = arith.constant 0 : i32
    %c0_i32_1 = arith.constant 0 : i32
    return %arg0, %c0_i32, %c0_i32_0 : i32, i32, i32
  }
  func.func @transform_9(%arg0: i32, %arg1: i32) -> (i32, i32, i32) {
    %c0_i32 = arith.constant 0 : i32
    %c0_i32_0 = arith.constant 0 : i32
    %c0_i32_1 = arith.constant 0 : i32
    return %arg0, %c0_i32, %c0_i32_0 : i32, i32, i32
  }
  func.func @transform_10(%arg0: i32, %arg1: i32) -> (i32, i32, i32) {
    %c0_i32 = arith.constant 0 : i32
    %c0_i32_0 = arith.constant 0 : i32
    %c0_i32_1 = arith.constant 0 : i32
    return %arg0, %c0_i32, %c0_i32_0 : i32, i32, i32
  }
  func.func @transform_11(%arg0: i32, %arg1: i32) -> (i32, i32) {
    %c0_i32 = arith.constant 0 : i32
    %c0_i32_0 = arith.constant 0 : i32
    return %arg1, %c0_i32 : i32, i32
  }
  func.func @transform_12(%arg0: i32, %arg1: i32) -> (i32, i32) {
    %c0_i32 = arith.constant 0 : i32
    %c0_i32_0 = arith.constant 0 : i32
    %c0_i32_1 = arith.constant 0 : i32
    return %c0_i32, %c0_i32_0 : i32, i32
  }
}

</mosaic_0001>

<bundles_post_ra>
// kernel: pdhgnnp_forward.1
= control target key start
LH: loop header
LB: loop body
LE: loop exit
PB: predicated region body
PF: predicated region fallthrough
CT: control target
= control target key end

     0   :  { %s3674_s21 = smov 0   ;;  %s3676_s22 = smov 0   ;;  %s4578_s0 = inlined_call_operand.vmem [shape: f32[256,128], index: 0, kind: input, shape index: {}]   ;;  %s4579_s1 = inlined_call_operand.vmem [shape: f32[256,128], index: 1, kind: input, shape index: {}]   ;;  %s4580_s2 = inlined_call_operand.vmem [shape: bf16[256,256], index: 2, kind: input, shape index: {}]   ;;  %s4581_s3 = inlined_call_operand.vmem [shape: bf16[128,128], index: 3, kind: input, shape index: {}]   ;;  %s4582_s4 = inlined_call_operand.vmem [shape: f32[1,128], index: 4, kind: input, shape index: {}]   ;;  %s4583_s5 = inlined_call_operand.vmem [shape: bf16[128,128], index: 5, kind: input, shape index: {}]   ;;  %s4584_s6 = inlined_call_operand.vmem [shape: f32[1,128], index: 6, kind: input, shape index: {}]   ;;  %s4585_s7 = inlined_call_operand.vmem [shape: bf16[3,128,128], index: 7, kind: input, shape index: {}]   ;;  %s4586_s8 = inlined_call_operand.vmem [shape: f32[3,1,128], index: 8, kind: input, shape index: {}]   ;;  %s4587_s9 = inlined_call_operand.vmem [shape: bf16[3,128,128], index: 9, kind: input, shape index: {}]   ;;  %s4588_s10 = inlined_call_operand.vmem [shape: f32[3,1,128], index: 10, kind: input, shape index: {}]   ;;  %s4589_s11 = inlined_call_operand.vmem [shape: f32[256,128], index: 11, kind: output, shape index: {0}]   ;;  %s4590_s12 = inlined_call_operand.vmem [shape: f32[256,128], index: 12, kind: output, shape index: {1}]  }
   0x1   :  { %s3678_s23 = smov 0  }
   0x2 LB: > { %s35_s24 = sadd.s32 1, %s3603_s22  ;;  %p2809_p0 = scmp.ge.s32.totalorder %s3607_s23, 1  ;;  %s3607_s23 = sphi %s3678_s23, %s23_s23   ;;  %s3603_s22 = sphi %s3676_s22, %s4595_s22   ;;  %s3599_s21 = sphi %s3674_s21, %s4594_s21  }
   0x3   : > { %p37_p1 = scmp.ge.s32.totalorder %s35_s24, 3  ;;  %p410_p2 = scmp.lt.s32.totalorder %s3607_s23, 4 }
   0x5   : > { %s4597_s24 = smov (%p37_p1, %s35_s24), 0  ;;  %p411_p3 = pnand %p2809_p0, %p410_p2 }
   0x6   : > { %4591 = sst [smem:[#allocation5_spill]] %s4597_s24  ;;  %p476_p4 = scmp.lt.s32.totalorder (!%p411_p3), %s3599_s21, 2 }
   0x7   : > { %414 = sbr.rel (%p411_p3) target bundleno = 1169 (0x491), region = 64  ;;  %p499_p5 = scmp.eq.s32.totalorder (!%p411_p3), %s3599_s21, 0 }
   0xc   : > { %s4599_s21 = smov (!%p476_p4, %s3599_s21), 2  ;;  %504 = sbr.rel (!%p499_p5) target bundleno = 509 (0x1fd), region = 68  ;;  %v3489_v0 = vld [vmem:[%s4581_s3 + $0x38] sm:$0xff] (%p499_p5)   ;;  %v3490_v1 = vld [vmem:[%s4581_s3 + $0x30] sm:$0xff] (%p499_p5)   ;;  %v3491_v2 = vld [vmem:[%s4581_s3 + $0x28] sm:$0xff] (%p499_p5)  }
   0xd   : > { %s2935_s25 = sshll.u32 %s4599_s21, 6  ;;  %s483_s28 = scalar_lea.vmem %s4586_s8, %s4599_s21  ;;  %3273 = vmatprep.subr.bf16.mxu0 (%p499_p5), %v3489_v0  ;;  %v3492_v3 = vld [vmem:[%s4581_s3 + $0x20] sm:$0xff] (%p499_p5)   ;;  %v506_v5 = vld [vmem:[%s4579_s1 + $0x8] sm:$0xff] (%p499_p5)  ;;  %v3493_v7 = vld [vmem:[%s4581_s3 + $0x18] sm:$0xff] (%p499_p5)  }
   0xe   : > { %s3702_s13 = scalar_lea.vmem %s4585_s7, %s2935_s25  ;;  %s3707_s16 = scalar_lea.vmem %s4587_s9, %s2935_s25  ;;  %3274 = vmatpush3.bf16.msra.mxu0 (%p499_p5), %v3489_v0  ;;  %v505_v4 = vld [vmem:[%s4579_s1] sm:$0xff] (%p499_p5)  ;;  %v3494_v8 = vld [vmem:[%s4581_s3 + $0x10] sm:$0xff] (%p499_p5)   ;;  %v3495_v9 = vld [vmem:[%s4581_s3 + $0x8] sm:$0xff] (%p499_p5)  }
   0xf   : > { %3275 = vmatprep.subr.bf16.mxu0 (%p499_p5), %v3490_v1  ;;  %v537_v6 = vpack.c.bf16 (%p499_p5), %v506_v5, %v505_v4  ;;  %v3497_v10 = vld [vmem:[%s4583_s5 + $0x38] sm:$0xff] (%p499_p5)   ;;  %v3498_v11 = vld [vmem:[%s4583_s5 + $0x30] sm:$0xff] (%p499_p5)   ;;  %v3496_v12 = vld [vmem:[%s4581_s3] sm:$0xff] (%p499_p5)  }
  0x10   : > { %3321 = vmatprep.subr.bf16.mxu1 (%p499_p5), %v3497_v10  ;;  %v3499_v13 = vld [vmem:[%s4583_s5 + $0x28] sm:$0xff] (%p499_p5)   ;;  %v507_v14 = vld [vmem:[%s4579_s1 + $0x10] sm:$0xff] (%p499_p5)  ;;  %v508_v15 = vld [vmem:[%s4579_s1 + $0x18] sm:$0xff] (%p499_p5) }
  0x11   : > { %3289 = vmatprep.mubr.bf16.mxu0 %v537_v6  ;;  %3322 = vmatpush3.bf16.msra.mxu1 %v3497_v10  ;;  %v3500_v16 = vld [vmem:[%s4583_s5 + $0x20] sm:$0xff]   ;;  %v510_v18 = vld [vmem:[%s4579_s1 + $0x28] sm:$0xff]  ;;  %v538_v19 = vpack.c.bf16 %v508_v15, %v507_v14  ;;  %v3501_v21 = vld [vmem:[%s4583_s5 + $0x18] sm:$0xff]  }
  0x12   : > { %3276 = vmatpush3.bf16.msra.mxu0 %v3490_v1  ;;  %3323 = vmatprep.subr.bf16.mxu1 %v3498_v11  ;;  %v509_v17 = vld [vmem:[%s4579_s1 + $0x20] sm:$0xff]  ;;  %v511_v22 = vld [vmem:[%s4579_s1 + $0x30] sm:$0xff]  ;;  %v512_v23 = vld [vmem:[%s4579_s1 + $0x38] sm:$0xff] }
  0x13   : > { %3277 = vmatprep.subr.bf16.mxu0 %v3491_v2  ;;  %v539_v20 = vpack.c.bf16 %v510_v18, %v509_v17  ;;  %v513_v24 = vld [vmem:[%s4579_s1 + $0x40] sm:$0xff]  ;;  %v514_v25 = vld [vmem:[%s4579_s1 + $0x48] sm:$0xff]  ;;  %v540_v26 = vpack.c.bf16 %v512_v23, %v511_v22  ;;  %v515_v28 = vld [vmem:[%s4579_s1 + $0x50] sm:$0xff] }
  0x14   : > { %v541_v27 = vpack.c.bf16 %v514_v25, %v513_v24  ;;  %v516_v29 = vld [vmem:[%s4579_s1 + $0x58] sm:$0xff]  ;;  %v517_v30 = vld [vmem:[%s4579_s1 + $0x60] sm:$0xff]  ;;  %v518_v31 = vld [vmem:[%s4579_s1 + $0x68] sm:$0xff] }
  0x15   : > { %3324 = vmatpush3.bf16.msra.mxu1 %v3498_v11  ;;  %v542_v32 = vpack.c.bf16 %v516_v29, %v515_v28  ;;  %v543_v33 = vpack.c.bf16 %v518_v31, %v517_v30  ;;  %v519_v34 = vld [vmem:[%s4579_s1 + $0x70] sm:$0xff]  ;;  %v520_v35 = vld [vmem:[%s4579_s1 + $0x78] sm:$0xff]  ;;  %v521_v36 = vld [vmem:[%s4579_s1 + $0x80] sm:$0xff] }
  0x16   : > { %3278 = vmatpush3.bf16.msra.mxu0 %v3491_v2  ;;  %3325 = vmatprep.subr.bf16.mxu1 %v3499_v13  ;;  %v522_v37 = vld [vmem:[%s4579_s1 + $0x88] sm:$0xff]  ;;  %v544_v38 = vpack.c.bf16 %v520_v35, %v519_v34  ;;  %v523_v40 = vld [vmem:[%s4579_s1 + $0x90] sm:$0xff]  ;;  %v524_v41 = vld [vmem:[%s4579_s1 + $0x98] sm:$0xff] }
  0x17   : > { %3279 = vmatprep.subr.bf16.mxu0 %v3492_v3  ;;  %v545_v39 = vpack.c.bf16 %v522_v37, %v521_v36  ;;  %v525_v42 = vld [vmem:[%s4579_s1 + $0xa0] sm:$0xff]  ;;  %v526_v43 = vld [vmem:[%s4579_s1 + $0xa8] sm:$0xff]  ;;  %v546_v44 = vpack.c.bf16 %v524_v41, %v523_v40  ;;  %v527_v46 = vld [vmem:[%s4579_s1 + $0xb0] sm:$0xff] }
  0x18   : > { %v547_v45 = vpack.c.bf16 %v526_v43, %v525_v42  ;;  %v528_v47 = vld [vmem:[%s4579_s1 + $0xb8] sm:$0xff]  ;;  %v529_v48 = vld [vmem:[%s4579_s1 + $0xc0] sm:$0xff]  ;;  %v530_v49 = vld [vmem:[%s4579_s1 + $0xc8] sm:$0xff] }
  0x19   : > { %3326 = vmatpush3.bf16.msra.mxu1 %v3499_v13  ;;  %v548_v50 = vpack.c.bf16 %v528_v47, %v527_v46  ;;  %v549_v51 = vpack.c.bf16 %v530_v49, %v529_v48  ;;  %v531_v52 = vld [vmem:[%s4579_s1 + $0xd0] sm:$0xff]  ;;  %v532_v53 = vld [vmem:[%s4579_s1 + $0xd8] sm:$0xff]  ;;  %v533_v54 = vld [vmem:[%s4579_s1 + $0xe0] sm:$0xff] }
  0x1a   : > { %3280 = vmatpush3.bf16.msra.mxu0 %v3492_v3  ;;  %3327 = vmatprep.subr.bf16.mxu1 %v3500_v16  ;;  %v534_v55 = vld [vmem:[%s4579_s1 + $0xe8] sm:$0xff]  ;;  %v550_v56 = vpack.c.bf16 %v532_v53, %v531_v52  ;;  %v535_v58 = vld [vmem:[%s4579_s1 + $0xf0] sm:$0xff]  ;;  %v536_v59 = vld [vmem:[%s4579_s1 + $0xf8] sm:$0xff] }
  0x1b   : > { %3281 = vmatprep.subr.bf16.mxu0 %v3493_v7  ;;  %v551_v57 = vpack.c.bf16 %v534_v55, %v533_v54  ;;  %v552_v60 = vpack.c.bf16 %v536_v59, %v535_v58  ;;  %v3502_v61 = vld [vmem:[%s4583_s5 + $0x10] sm:$0xff]   ;;  %v3503_v62 = vld [vmem:[%s4583_s5 + $0x8] sm:$0xff]   ;;  %v3504_v63 = vld [vmem:[%s4583_s5] sm:$0xff]  }
  0x1c   : > { %v3860_v2 = vld [vmem:[%s4582_s4] ss:$0 sm:$0xff] }
  0x1d   : > { %3328 = vmatpush3.bf16.msra.mxu1 %v3500_v16 }
  0x1e   : > { %3282 = vmatpush3.bf16.msra.mxu0 %v3493_v7  ;;  %3329 = vmatprep.subr.bf16.mxu1 %v3501_v21 }
  0x1f   : > { %3283 = vmatprep.subr.bf16.mxu0 %v3494_v8 }
  0x21   : > { %3330 = vmatpush3.bf16.msra.mxu1 %v3501_v21 }
  0x22   : > { %3284 = vmatpush3.bf16.msra.mxu0 %v3494_v8  ;;  %3331 = vmatprep.subr.bf16.mxu1 %v3502_v61 }
  0x23   : > { %3285 = vmatprep.subr.bf16.mxu0 %v3495_v9 }
  0x25   : > { %3332 = vmatpush3.bf16.msra.mxu1 %v3502_v61 }
  0x26   : > { %3286 = vmatpush3.bf16.msra.mxu0 %v3495_v9  ;;  %3333 = vmatprep.subr.bf16.mxu1 %v3503_v62 }
  0x27   : > { %3287 = vmatprep.subr.bf16.mxu0 %v3496_v12 }
  0x29   : > { %3334 = vmatpush3.bf16.msra.mxu1 %v3503_v62 }
  0x2a   : > { %3288 = vmatpush3.bf16.msra.mxu0 %v3496_v12  ;;  %3335 = vmatprep.subr.bf16.mxu1 %v3504_v63 }
  0x2d   : > { %3290 = vmatmul.mubr.bf16.vlgmr.msra.gmra.mxu0 %v538_v19  ;;  %3336 = vmatpush3.bf16.msra.mxu1 %v3504_v63 }
  0x2e   : > { %3293 = vmatprep.mubr.bf16.mxu0 %v539_v20 }
  0x35   : > { %3294 = vmatmul.mubr.bf16.gmra.mxu0 %v540_v26 }
  0x36   : > { %3297 = vmatprep.mubr.bf16.mxu0 %v541_v27 }
  0x3d   : > { %3298 = vmatmul.mubr.bf16.gmra.mxu0 %v542_v32 }
  0x3e   : > { %3301 = vmatprep.mubr.bf16.mxu0 %v543_v33 }
  0x45   : > { %3302 = vmatmul.mubr.bf16.gmra.mxu0 %v544_v38 }
  0x46   : > { %3305 = vmatprep.mubr.bf16.mxu0 %v545_v39 }
  0x4d   : > { %3306 = vmatmul.mubr.bf16.gmra.mxu0 %v546_v44 }
  0x4e   : > { %3309 = vmatprep.mubr.bf16.mxu0 %v547_v45 }
  0x55   : > { %3310 = vmatmul.mubr.bf16.gmra.mxu0 %v548_v50 }
  0x56   : > { %3313 = vmatprep.mubr.bf16.mxu0 %v549_v51 }
  0x5d   : > { %3314 = vmatmul.mubr.bf16.gmra.mxu0 %v550_v56 }
  0x5e   : > { %3317 = vmatprep.mubr.bf16.mxu0 %v551_v57 }
  0x65   : > { %3318 = vmatmul.mubr.bf16.gmra.mxu0 %v552_v60 }
  0xed   : > { %v3291_v0 = vpop.f32.mrf.mxu0 }
  0xee   : > { %v667_v6 = vadd.f32 %v3291_v0, %v3860_v2 }
  0xef   : > { %v658_v1 = vpop.f32.mrf.mxu0 }
  0xf0   : > { %v659_v4 = vadd.f32 %v3860_v2, %v658_v1  ;;  %v787_v13 = vmax.f32 %v667_v6, 0.0 }
  0xf1   : > { %v3292_v3 = vpop.f32.mrf.mxu0 }
  0xf2   : > { %v670_v5 = vadd.f32 %v3292_v3, %v3860_v2  ;;  %v785_v11 = vmax.f32 %v659_v4, 0.0 }
  0xf3   : > { %v661_v7 = vpop.f32.mrf.mxu0 }
  0xf4   : > { %v662_v8 = vadd.f32 %v3860_v2, %v661_v7  ;;  %v788_v9 = vmax.f32 %v670_v5, 0.0 }
  0xf5   : > { %v3295_v10 = vpop.f32.mrf.mxu0 }
  0xf6   : > { %v786_v12 = vmax.f32 %v662_v8, 0.0  ;;  %v818_v16 = vpack.c.bf16 %v788_v9, %v787_v13  ;;  %v683_v20 = vadd.f32 %v3295_v10, %v3860_v2 }
  0xf7   : > { %v674_v14 = vpop.f32.mrf.mxu0 }
  0xf8   : > { %v817_v15 = vpack.c.bf16 %v786_v12, %v785_v11  ;;  %v675_v18 = vadd.f32 %v3860_v2, %v674_v14  ;;  %v791_v27 = vmax.f32 %v683_v20, 0.0 }
  0xf9   : > { %v3296_v17 = vpop.f32.mrf.mxu0 }
  0xfa   : > { %v686_v19 = vadd.f32 %v3296_v17, %v3860_v2  ;;  %3337 = vmatprep.mubr.bf16.mxu1 %v817_v15  ;;  %v789_v25 = vmax.f32 %v675_v18, 0.0 }
  0xfb   : > { %v677_v21 = vpop.f32.mrf.mxu0  ;;  %3338 = vmatmul.mubr.bf16.vlgmr.msra.gmra.mxu1 %v818_v16 }
  0xfc   : > { %v678_v22 = vadd.f32 %v3860_v2, %v677_v21  ;;  %v792_v23 = vmax.f32 %v686_v19, 0.0 }
  0xfd   : > { %v3299_v24 = vpop.f32.mrf.mxu0 }
  0xfe   : > { %v790_v26 = vmax.f32 %v678_v22, 0.0  ;;  %v820_v30 = vpack.c.bf16 %v792_v23, %v791_v27  ;;  %v699_v34 = vadd.f32 %v3299_v24, %v3860_v2 }
  0xff   : > { %v690_v28 = vpop.f32.mrf.mxu0 }
 0x100   : > { %v819_v29 = vpack.c.bf16 %v790_v26, %v789_v25  ;;  %v691_v32 = vadd.f32 %v3860_v2, %v690_v28  ;;  %v795_v41 = vmax.f32 %v699_v34, 0.0 }
 0x101   : > { %v3300_v31 = vpop.f32.mrf.mxu0 }
 0x102   : > { %v702_v33 = vadd.f32 %v3300_v31, %v3860_v2  ;;  %3341 = vmatprep.mubr.bf16.mxu1 %v819_v29  ;;  %v793_v39 = vmax.f32 %v691_v32, 0.0 }
 0x103   : > { %v693_v35 = vpop.f32.mrf.mxu0  ;;  %3342 = vmatmul.mubr.bf16.gmra.mxu1 %v820_v30 }
 0x104   : > { %v694_v36 = vadd.f32 %v3860_v2, %v693_v35  ;;  %v796_v37 = vmax.f32 %v702_v33, 0.0 }
 0x105   : > { %v3303_v38 = vpop.f32.mrf.mxu0 }
 0x106   : > { %v794_v40 = vmax.f32 %v694_v36, 0.0  ;;  %v822_v44 = vpack.c.bf16 %v796_v37, %v795_v41  ;;  %v715_v48 = vadd.f32 %v3303_v38, %v3860_v2 }
 0x107   : > { %v706_v42 = vpop.f32.mrf.mxu0 }
 0x108   : > { %v821_v43 = vpack.c.bf16 %v794_v40, %v793_v39  ;;  %v707_v46 = vadd.f32 %v3860_v2, %v706_v42  ;;  %v799_v55 = vmax.f32 %v715_v48, 0.0 }
 0x109   : > { %v3304_v45 = vpop.f32.mrf.mxu0 }
 0x10a   : > { %v718_v47 = vadd.f32 %v3304_v45, %v3860_v2  ;;  %3345 = vmatprep.mubr.bf16.mxu1 %v821_v43  ;;  %v797_v53 = vmax.f32 %v707_v46, 0.0 }
 0x10b   : > { %v709_v49 = vpop.f32.mrf.mxu0  ;;  %3346 = vmatmul.mubr.bf16.gmra.mxu1 %v822_v44 }
 0x10c   : > { %v710_v50 = vadd.f32 %v3860_v2, %v709_v49  ;;  %v800_v51 = vmax.f32 %v718_v47, 0.0 }
 0x10d   : > { %v3307_v52 = vpop.f32.mrf.mxu0 }
 0x10e   : > { %v798_v54 = vmax.f32 %v710_v50, 0.0  ;;  %v824_v58 = vpack.c.bf16 %v800_v51, %v799_v55  ;;  %v731_v62 = vadd.f32 %v3307_v52, %v3860_v2  ;;  %v1097_v50 = vld [vmem:[%s4578_s0] sm:$0xff]  ;;  %v1098_v51 = vld [vmem:[%s4578_s0 + $0x8] sm:$0xff]  ;;  %v1100_v52 = vld [vmem:[%s4578_s0 + $0x18] sm:$0xff] }
 0x10f   : > { %v722_v56 = vpop.f32.mrf.mxu0  ;;  %1129 = vst [vmem:[#allocation2 + $0xb0] sm:$0xff] %v1097_v50  ;;  %1130 = vst [vmem:[#allocation2] sm:$0xff] %v1098_v51  ;;  %v1103_v55 = vld [vmem:[%s4578_s0 + $0x30] sm:$0xff] }
 0x110   : > { %v823_v57 = vpack.c.bf16 %v798_v54, %v797_v53  ;;  %v723_v60 = vadd.f32 %v3860_v2, %v722_v56  ;;  %v803_v6 = vmax.f32 %v731_v62, 0.0  ;;  %v1101_v53 = vld [vmem:[%s4578_s0 + $0x20] sm:$0xff]  ;;  %v1102_v54 = vld [vmem:[%s4578_s0 + $0x28] sm:$0xff]  ;;  %v1104_v56 = vld [vmem:[%s4578_s0 + $0x38] sm:$0xff]  ;;  %1132 = vst [vmem:[#allocation2 + $0x18] sm:$0xff] %v1100_v52 }
 0x111   : > { %v3308_v59 = vpop.f32.mrf.mxu0  ;;  %1133 = vst [vmem:[#allocation2 + $0x50] sm:$0xff] %v1101_v53  ;;  %1134 = vst [vmem:[#allocation2 + $0x68] sm:$0xff] %v1102_v54  ;;  %v1110_v62 = vld [vmem:[%s4578_s0 + $0x68] sm:$0xff] }
 0x112   : > { %v734_v61 = vadd.f32 %v3308_v59, %v3860_v2  ;;  %3349 = vmatprep.mubr.bf16.mxu1 %v823_v57  ;;  %v801_v4 = vmax.f32 %v723_v60, 0.0  ;;  %v1105_v57 = vld [vmem:[%s4578_s0 + $0x40] sm:$0xff]  ;;  %v1107_v59 = vld [vmem:[%s4578_s0 + $0x50] sm:$0xff]  ;;  %v1108_v60 = vld [vmem:[%s4578_s0 + $0x58] sm:$0xff]  ;;  %1135 = vst [vmem:[#allocation2 + $0x30] sm:$0xff] %v1103_v55 }
 0x113   : > { %v725_v63 = vpop.f32.mrf.mxu0  ;;  %3350 = vmatmul.mubr.bf16.gmra.mxu1 %v824_v58  ;;  %v1106_v58 = vld [vmem:[%s4578_s0 + $0x48] sm:$0xff]  ;;  %1136 = vst [vmem:[#allocation2 + $0x48] sm:$0xff] %v1104_v56  ;;  %1137 = vst [vmem:[#allocation2 + $0x80] sm:$0xff] %v1105_v57 }
 0x114   : > { %v726_v0 = vadd.f32 %v3860_v2, %v725_v63  ;;  %v804_v1 = vmax.f32 %v734_v61, 0.0  ;;  %v1109_v61 = vld [vmem:[%s4578_s0 + $0x60] sm:$0xff]  ;;  %v1111_v63 = vld [vmem:[%s4578_s0 + $0x70] sm:$0xff]  ;;  %1138 = vst [vmem:[#allocation2 + $0x88] sm:$0xff] %v1106_v58  ;;  %1139 = vst [vmem:[#allocation2 + $0xe8] sm:$0xff] %v1107_v59 }
 0x115   : > { %v3311_v3 = vpop.f32.mrf.mxu0  ;;  %1140 = vst [vmem:[#allocation2 + $0xb8] sm:$0xff] %v1108_v60  ;;  %1141 = vst [vmem:[#allocation2 + $0x60] sm:$0xff] %v1109_v61 }
 0x116   : > { %v802_v5 = vmax.f32 %v726_v0, 0.0  ;;  %v826_v9 = vpack.c.bf16 %v804_v1, %v803_v6  ;;  %v747_v13 = vadd.f32 %v3311_v3, %v3860_v2  ;;  %v1112_v0 = vld [vmem:[%s4578_s0 + $0x78] sm:$0xff]  ;;  %v1113_v1 = vld [vmem:[%s4578_s0 + $0x80] sm:$0xff]  ;;  %v1114_v3 = vld [vmem:[%s4578_s0 + $0x88] sm:$0xff]  ;;  %1142 = vst [vmem:[#allocation2 + $0xf0] sm:$0xff] %v1110_v62 }
 0x117   : > { %v738_v7 = vpop.f32.mrf.mxu0  ;;  %1143 = vst [vmem:[#allocation2 + $0x8] sm:$0xff] %v1111_v63  ;;  %v1117_v6 = vld [vmem:[%s4578_s0 + $0xa0] sm:$0xff]  ;;  %1144 = vst [vmem:[#allocation2 + $0x78] sm:$0xff] %v1112_v0 }
 0x118   : > { %v825_v8 = vpack.c.bf16 %v802_v5, %v801_v4  ;;  %v739_v11 = vadd.f32 %v3860_v2, %v738_v7  ;;  %v807_v20 = vmax.f32 %v747_v13, 0.0  ;;  %v1115_v4 = vld [vmem:[%s4578_s0 + $0x90] sm:$0xff]  ;;  %v1116_v5 = vld [vmem:[%s4578_s0 + $0x98] sm:$0xff]  ;;  %1145 = vst [vmem:[#allocation2 + $0x38] sm:$0xff] %v1113_v1  ;;  %1146 = vst [vmem:[#allocation2 + $0x58] sm:$0xff] %v1114_v3 }
 0x119   : > { %v3312_v10 = vpop.f32.mrf.mxu0  ;;  %v1118_v7 = vld [vmem:[%s4578_s0 + $0xa8] sm:$0xff]  ;;  %1147 = vst [vmem:[#allocation2 + $0x40] sm:$0xff] %v1115_v4  ;;  %1148 = vst [vmem:[#allocation2 + $0xc8] sm:$0xff] %v1116_v5  ;;  %v1124_v13 = vld [vmem:[%s4578_s0 + $0xd8] sm:$0xff] }
 0x11a   : > { %v750_v12 = vadd.f32 %v3312_v10, %v3860_v2  ;;  %3353 = vmatprep.mubr.bf16.mxu1 %v825_v8  ;;  %v805_v18 = vmax.f32 %v739_v11, 0.0  ;;  %v1119_v8 = vld [vmem:[%s4578_s0 + $0xb0] sm:$0xff]  ;;  %1149 = vst [vmem:[#allocation2 + $0xe0] sm:$0xff] %v1117_v6  ;;  %v1121_v10 = vld [vmem:[%s4578_s0 + $0xc0] sm:$0xff]  ;;  %v1122_v11 = vld [vmem:[%s4578_s0 + $0xc8] sm:$0xff] }
 0x11b   : > { %v741_v14 = vpop.f32.mrf.mxu0  ;;  %3354 = vmatmul.mubr.bf16.gmra.mxu1 %v826_v9  ;;  %v1120_v9 = vld [vmem:[%s4578_s0 + $0xb8] sm:$0xff]  ;;  %1150 = vst [vmem:[#allocation2 + $0x90] sm:$0xff] %v1118_v7  ;;  %1151 = vst [vmem:[#allocation2 + $0x70] sm:$0xff] %v1119_v8 }
 0x11c   : > { %v742_v15 = vadd.f32 %v3860_v2, %v741_v14  ;;  %v808_v16 = vmax.f32 %v750_v12, 0.0  ;;  %v1123_v12 = vld [vmem:[%s4578_s0 + $0xd0] sm:$0xff]  ;;  %1152 = vst [vmem:[#allocation2 + $0xc0] sm:$0xff] %v1120_v9  ;;  %v1125_v14 = vld [vmem:[%s4578_s0 + $0xe0] sm:$0xff]  ;;  %1153 = vst [vmem:[#allocation2 + $0xa8] sm:$0xff] %v1121_v10 }
 0x11d   : > { %v3315_v17 = vpop.f32.mrf.mxu0  ;;  %1154 = vst [vmem:[#allocation2 + $0xd0] sm:$0xff] %v1122_v11  ;;  %1155 = vst [vmem:[#allocation2 + $0x10] sm:$0xff] %v1123_v12 }
 0x11e   : > { %v806_v19 = vmax.f32 %v742_v15, 0.0  ;;  %v828_v23 = vpack.c.bf16 %v808_v16, %v807_v20  ;;  %v763_v27 = vadd.f32 %v3315_v17, %v3860_v2  ;;  %v1126_v15 = vld [vmem:[%s4578_s0 + $0xe8] sm:$0xff]  ;;  %v1127_v16 = vld [vmem:[%s4578_s0 + $0xf0] sm:$0xff]  ;;  %v1128_v17 = vld [vmem:[%s4578_s0 + $0xf8] sm:$0xff]  ;;  %1156 = vst [vmem:[#allocation2 + $0x28] sm:$0xff] %v1124_v13 }
 0x11f   : > { %v754_v21 = vpop.f32.mrf.mxu0  ;;  %1157 = vst [vmem:[#allocation2 + $0xa0] sm:$0xff] %v1125_v14  ;;  %1158 = vst [vmem:[#allocation2 + $0xf8] sm:$0xff] %v1126_v15 }
 0x120   : > { %v827_v22 = vpack.c.bf16 %v806_v19, %v805_v18  ;;  %v755_v25 = vadd.f32 %v3860_v2, %v754_v21  ;;  %v811_v34 = vmax.f32 %v763_v27, 0.0  ;;  %1159 = vst [vmem:[#allocation2 + $0x20] sm:$0xff] %v1127_v16  ;;  %1160 = vst [vmem:[#allocation2 + $0x98] sm:$0xff] %v1128_v17  ;;  %v3993_v18 = vld [vmem:[%s4584_s6] ss:$0 sm:$0xff] }
 0x121   : > { %v3316_v24 = vpop.f32.mrf.mxu0 }
 0x122   : > { %v766_v26 = vadd.f32 %v3316_v24, %v3860_v2  ;;  %3357 = vmatprep.mubr.bf16.mxu1 %v827_v22  ;;  %v809_v32 = vmax.f32 %v755_v25, 0.0 }
 0x123   : > { %v757_v28 = vpop.f32.mrf.mxu0  ;;  %3358 = vmatmul.mubr.bf16.gmra.mxu1 %v828_v23 }
 0x124   : > { %v758_v29 = vadd.f32 %v3860_v2, %v757_v28  ;;  %v812_v30 = vmax.f32 %v766_v26, 0.0 }
 0x125   : > { %v3319_v31 = vpop.f32.mrf.mxu0 }
 0x126   : > { %v810_v33 = vmax.f32 %v758_v29, 0.0  ;;  %v830_v37 = vpack.c.bf16 %v812_v30, %v811_v34  ;;  %v779_v41 = vadd.f32 %v3319_v31, %v3860_v2 }
 0x127   : > { %v770_v35 = vpop.f32.mrf.mxu0 }
 0x128   : > { %v829_v36 = vpack.c.bf16 %v810_v33, %v809_v32  ;;  %v771_v39 = vadd.f32 %v3860_v2, %v770_v35  ;;  %v815_v47 = vmax.f32 %v779_v41, 0.0 }
 0x129   : > { %v3320_v38 = vpop.f32.mrf.mxu0 }
 0x12a   : > { %v782_v40 = vadd.f32 %v3320_v38, %v3860_v2  ;;  %3361 = vmatprep.mubr.bf16.mxu1 %v829_v36  ;;  %v813_v45 = vmax.f32 %v771_v39, 0.0 }
 0x12b   : > { %v773_v42 = vpop.f32.mrf.mxu0  ;;  %3362 = vmatmul.mubr.bf16.gmra.mxu1 %v830_v37 }
 0x12c   : > { %v774_v43 = vadd.f32 %v3860_v2, %v773_v42  ;;  %v816_v44 = vmax.f32 %v782_v40, 0.0  ;;  %v1099_v2 = vld [vmem:[%s4578_s0 + $0x10] sm:$0xff] }
 0x12d   : > { %1131 = vst [vmem:[#allocation2 + $0xd8] sm:$0xff] %v1099_v2 }
 0x12e   : > { %v814_v46 = vmax.f32 %v774_v43, 0.0  ;;  %v832_v49 = vpack.c.bf16 %v816_v44, %v815_v47 }
 0x130   : > { %v831_v48 = vpack.c.bf16 %v814_v46, %v813_v45 }
 0x132   : > { %3365 = vmatprep.mubr.bf16.mxu1 %v831_v48 }
 0x133   : > { %3366 = vmatmul.mubr.bf16.gmra.mxu1 %v832_v49 }
 0x1bb   : > { %v3339_v19 = vpop.f32.mrf.mxu1 }
 0x1bc   : > { %v947_v20 = vadd.f32 %v3339_v19, %v3993_v18 }
 0x1bd   : > { %v938_v21 = vpop.f32.mrf.mxu1 }
 0x1be   : > { %1067 = vst [vmem:[#allocation4 + $0xe8] sm:$0xff] %v947_v20  ;;  %v939_v22 = vadd.f32 %v3993_v18, %v938_v21 }
 0x1bf   : > { %v3340_v23 = vpop.f32.mrf.mxu1 }
 0x1c0   : > { %1065 = vst [vmem:[#allocation4 + $0x80] sm:$0xff] %v939_v22  ;;  %v950_v24 = vadd.f32 %v3340_v23, %v3993_v18 }
 0x1c1   : > { %v941_v25 = vpop.f32.mrf.mxu1 }
 0x1c2   : > { %1068 = vst [vmem:[#allocation4 + $0x78] sm:$0xff] %v950_v24  ;;  %v942_v26 = vadd.f32 %v3993_v18, %v941_v25 }
 0x1c3   : > { %v3343_v27 = vpop.f32.mrf.mxu1 }
 0x1c4   : > { %1066 = vst [vmem:[#allocation4 + $0xc8] sm:$0xff] %v942_v26  ;;  %v963_v28 = vadd.f32 %v3343_v27, %v3993_v18 }
 0x1c5   : > { %v954_v29 = vpop.f32.mrf.mxu1 }
 0x1c6   : > { %1071 = vst [vmem:[#allocation4 + $0x58] sm:$0xff] %v963_v28  ;;  %v955_v30 = vadd.f32 %v3993_v18, %v954_v29 }
 0x1c7   : > { %v3344_v31 = vpop.f32.mrf.mxu1 }
 0x1c8   : > { %1069 = vst [vmem:[#allocation4 + $0x8] sm:$0xff] %v955_v30  ;;  %v966_v32 = vadd.f32 %v3344_v31, %v3993_v18 }
 0x1c9   : > { %v957_v33 = vpop.f32.mrf.mxu1 }
 0x1ca   : > { %1072 = vst [vmem:[#allocation4 + $0xa8] sm:$0xff] %v966_v32  ;;  %v958_v34 = vadd.f32 %v3993_v18, %v957_v33 }
 0x1cb   : > { %v3347_v35 = vpop.f32.mrf.mxu1 }
 0x1cc   : > { %1070 = vst [vmem:[#allocation4 + $0x90] sm:$0xff] %v958_v34  ;;  %v979_v36 = vadd.f32 %v3347_v35, %v3993_v18 }
 0x1cd   : > { %v970_v37 = vpop.f32.mrf.mxu1 }
 0x1ce   : > { %1075 = vst [vmem:[#allocation4 + $0x38] sm:$0xff] %v979_v36  ;;  %v971_v38 = vadd.f32 %v3993_v18, %v970_v37 }
 0x1cf   : > { %v3348_v39 = vpop.f32.mrf.mxu1 }
 0x1d0   : > { %1073 = vst [vmem:[#allocation4 + $0xd0] sm:$0xff] %v971_v38  ;;  %v982_v40 = vadd.f32 %v3348_v39, %v3993_v18 }
 0x1d1   : > { %v973_v41 = vpop.f32.mrf.mxu1 }
 0x1d2   : > { %1076 = vst [vmem:[#allocation4 + $0x40] sm:$0xff] %v982_v40  ;;  %v974_v42 = vadd.f32 %v3993_v18, %v973_v41 }
 0x1d3   : > { %v3351_v43 = vpop.f32.mrf.mxu1 }
 0x1d4   : > { %1074 = vst [vmem:[#allocation4 + $0xb0] sm:$0xff] %v974_v42  ;;  %v995_v44 = vadd.f32 %v3351_v43, %v3993_v18 }
 0x1d5   : > { %v986_v45 = vpop.f32.mrf.mxu1 }
 0x1d6   : > { %1079 = vst [vmem:[#allocation4 + $0x18] sm:$0xff] %v995_v44  ;;  %v987_v46 = vadd.f32 %v3993_v18, %v986_v45 }
 0x1d7   : > { %v3352_v47 = vpop.f32.mrf.mxu1 }
 0x1d8   : > { %1077 = vst [vmem:[#allocation4 + $0xe0] sm:$0xff] %v987_v46  ;;  %v998_v48 = vadd.f32 %v3352_v47, %v3993_v18 }
 0x1d9   : > { %v989_v49 = vpop.f32.mrf.mxu1 }
 0x1da   : > { %1080 = vst [vmem:[#allocation4 + $0x68] sm:$0xff] %v998_v48  ;;  %v990_v50 = vadd.f32 %v3993_v18, %v989_v49 }
 0x1db   : > { %v3355_v51 = vpop.f32.mrf.mxu1 }
 0x1dc   : > { %1078 = vst [vmem:[#allocation4 + $0x60] sm:$0xff] %v990_v50  ;;  %v1011_v2 = vadd.f32 %v3355_v51, %v3993_v18 }
 0x1dd   : > { %v1002_v52 = vpop.f32.mrf.mxu1 }
 0x1de   : > { %1083 = vst [vmem:[#allocation4 + $0x50] sm:$0xff] %v1011_v2  ;;  %v1003_v53 = vadd.f32 %v3993_v18, %v1002_v52 }
 0x1df   : > { %v3356_v54 = vpop.f32.mrf.mxu1 }
 0x1e0   : > { %1081 = vst [vmem:[#allocation4 + $0x10] sm:$0xff] %v1003_v53  ;;  %v1014_v55 = vadd.f32 %v3356_v54, %v3993_v18 }
 0x1e1   : > { %v1005_v56 = vpop.f32.mrf.mxu1 }
 0x1e2   : > { %1084 = vst [vmem:[#allocation4 + $0xa0] sm:$0xff] %v1014_v55  ;;  %v1006_v57 = vadd.f32 %v3993_v18, %v1005_v56 }
 0x1e3   : > { %v3359_v58 = vpop.f32.mrf.mxu1 }
 0x1e4   : > { %1082 = vst [vmem:[#allocation4 + $0x70] sm:$0xff] %v1006_v57  ;;  %v1027_v59 = vadd.f32 %v3359_v58, %v3993_v18 }
 0x1e5   : > { %v1018_v60 = vpop.f32.mrf.mxu1 }
 0x1e6   : > { %1087 = vst [vmem:[#allocation4 + $0x20] sm:$0xff] %v1027_v59  ;;  %v1019_v61 = vadd.f32 %v3993_v18, %v1018_v60 }
 0x1e7   : > { %v3360_v62 = vpop.f32.mrf.mxu1 }
 0x1e8   : > { %1085 = vst [vmem:[#allocation4 + $0xd8] sm:$0xff] %v1019_v61  ;;  %v1030_v63 = vadd.f32 %v3360_v62, %v3993_v18 }
 0x1e9   : > { %v1021_v0 = vpop.f32.mrf.mxu1 }
 0x1ea   : > { %1088 = vst [vmem:[#allocation4 + $0xf0] sm:$0xff] %v1030_v63  ;;  %v1022_v1 = vadd.f32 %v3993_v18, %v1021_v0 }
 0x1eb   : > { %v3363_v3 = vpop.f32.mrf.mxu1 }
 0x1ec   : > { %1086 = vst [vmem:[#allocation4 + $0x30] sm:$0xff] %v1022_v1  ;;  %v1043_v4 = vadd.f32 %v3363_v3, %v3993_v18 }
 0x1ed   : > { %v1034_v5 = vpop.f32.mrf.mxu1 }
 0x1ee   : > { %1091 = vst [vmem:[#allocation4 + $0xf8] sm:$0xff] %v1043_v4  ;;  %v1035_v6 = vadd.f32 %v3993_v18, %v1034_v5 }
 0x1ef   : > { %v3364_v7 = vpop.f32.mrf.mxu1 }
 0x1f0   : > { %1089 = vst [vmem:[#allocation4 + $0x88] sm:$0xff] %v1035_v6  ;;  %v1046_v8 = vadd.f32 %v3364_v7, %v3993_v18 }
 0x1f1   : > { %v1037_v9 = vpop.f32.mrf.mxu1 }
 0x1f2   : > { %1092 = vst [vmem:[#allocation4 + $0xc0] sm:$0xff] %v1046_v8  ;;  %v1038_v10 = vadd.f32 %v3993_v18, %v1037_v9 }
 0x1f3   : > { %v3367_v11 = vpop.f32.mrf.mxu1 }
 0x1f4   : > { %1090 = vst [vmem:[#allocation4 + $0x48] sm:$0xff] %v1038_v10  ;;  %v1059_v12 = vadd.f32 %v3367_v11, %v3993_v18 }
 0x1f5   : > { %v1050_v13 = vpop.f32.mrf.mxu1 }
 0x1f6   : > { %1095 = vst [vmem:[#allocation4 + $0x28] sm:$0xff] %v1059_v12  ;;  %v1051_v14 = vadd.f32 %v3993_v18, %v1050_v13 }
 0x1f7   : > { %v3368_v15 = vpop.f32.mrf.mxu1 }
 0x1f8   : > { %1093 = vst [vmem:[#allocation4 + $0xb8] sm:$0xff] %v1051_v14  ;;  %v1062_v16 = vadd.f32 %v3368_v15, %v3993_v18 }
 0x1f9   : > { %v1053_v17 = vpop.f32.mrf.mxu1 }
 0x1fa   : > { %1096 = vst [vmem:[#allocation4 + $0x98] sm:$0xff] %v1062_v16  ;;  %v1054_v19 = vadd.f32 %v3993_v18, %v1053_v17 }
 0x1fc   : > { %1094 = vst [vmem:[#allocation4] sm:$0xff] %v1054_v19 }
 0x1fd PF: > { %v3505_v20 = vld [vmem:[%s3702_s13 + $0x38] sm:$0xff]   ;;  %v3506_v21 = vld [vmem:[%s3702_s13 + $0x30] sm:$0xff]   ;;  %v3507_v22 = vld [vmem:[%s3702_s13 + $0x28] sm:$0xff]   ;;  %s4592_s18 = scalar_lea.vmem %s4588_s10, %s4599_s21 }
 0x1fe   : > { %3369 = vmatprep.subr.bf16.mxu1 %v3505_v20  ;;  %v3508_v23 = vld [vmem:[%s3702_s13 + $0x20] sm:$0xff]   ;;  %v1164_v18 = vld [vmem:[#allocation2 + $0xb0] sm:$0xff]  ;;  %v3509_v26 = vld [vmem:[%s3702_s13 + $0x18] sm:$0xff]  }
 0x1ff   : > { %3370 = vmatpush3.bf16.msra.mxu1 %v3505_v20  ;;  %v1165_v24 = vld [vmem:[#allocation2] sm:$0xff]  ;;  %v3510_v27 = vld [vmem:[%s3702_s13 + $0x10] sm:$0xff]   ;;  %v3511_v28 = vld [vmem:[%s3702_s13 + $0x8] sm:$0xff]  }
 0x200   : > { %3371 = vmatprep.subr.bf16.mxu1 %v3506_v21  ;;  %v1196_v25 = vpack.c.bf16 %v1165_v24, %v1164_v18  ;;  %v3512_v29 = vld [vmem:[%s3702_s13] sm:$0xff]   ;;  %v1166_v30 = vld [vmem:[#allocation2 + $0xd8] sm:$0xff]  ;;  %v1168_v32 = vld [vmem:[#allocation2 + $0x50] sm:$0xff] }
 0x201   : > { %v1167_v31 = vld [vmem:[#allocation2 + $0x18] sm:$0xff]  ;;  %v1169_v33 = vld [vmem:[#allocation2 + $0x68] sm:$0xff]  ;;  %v1170_v36 = vld [vmem:[#allocation2 + $0x30] sm:$0xff] }
 0x202   : > { %3385 = vmatprep.mubr.bf16.mxu1 %v1196_v25  ;;  %v1197_v34 = vpack.c.bf16 %v1167_v31, %v1166_v30  ;;  %v1198_v35 = vpack.c.bf16 %v1169_v33, %v1168_v32  ;;  %v1171_v37 = vld [vmem:[#allocation2 + $0x48] sm:$0xff]  ;;  %v1172_v38 = vld [vmem:[#allocation2 + $0x80] sm:$0xff]  ;;  %v1175_v43 = vld [vmem:[#allocation2 + $0xb8] sm:$0xff] }
 0x203   : > { %3372 = vmatpush3.bf16.msra.mxu1 %v3506_v21  ;;  %v1173_v39 = vld [vmem:[#allocation2 + $0x88] sm:$0xff]  ;;  %v1199_v40 = vpack.c.bf16 %v1171_v37, %v1170_v36  ;;  %v1176_v44 = vld [vmem:[#allocation2 + $0x60] sm:$0xff]  ;;  %v1177_v45 = vld [vmem:[#allocation2 + $0xf0] sm:$0xff] }
 0x204   : > { %3373 = vmatprep.subr.bf16.mxu1 %v3507_v22  ;;  %v1200_v41 = vpack.c.bf16 %v1173_v39, %v1172_v38  ;;  %v1174_v42 = vld [vmem:[#allocation2 + $0xe8] sm:$0xff]  ;;  %v1202_v47 = vpack.c.bf16 %v1177_v45, %v1176_v44  ;;  %v1179_v49 = vld [vmem:[#allocation2 + $0x78] sm:$0xff]  ;;  %v1182_v53 = vld [vmem:[#allocation2 + $0x40] sm:$0xff] }
 0x205   : > { %v1201_v46 = vpack.c.bf16 %v1175_v43, %v1174_v42  ;;  %v1178_v48 = vld [vmem:[#allocation2 + $0x8] sm:$0xff]  ;;  %v1180_v50 = vld [vmem:[#allocation2 + $0x38] sm:$0xff]  ;;  %v1184_v55 = vld [vmem:[#allocation2 + $0xe0] sm:$0xff] }
 0x206   : > { %v1181_v51 = vld [vmem:[#allocation2 + $0x58] sm:$0xff]  ;;  %v1203_v2 = vpack.c.bf16 %v1179_v49, %v1178_v48  ;;  %v1183_v54 = vld [vmem:[#allocation2 + $0xc8] sm:$0xff]  ;;  %v1185_v56 = vld [vmem:[#allocation2 + $0x90] sm:$0xff] }
 0x207   : > { %3374 = vmatpush3.bf16.msra.mxu1 %v3507_v22  ;;  %v1204_v52 = vpack.c.bf16 %v1181_v51, %v1180_v50  ;;  %v1205_v57 = vpack.c.bf16 %v1183_v54, %v1182_v53  ;;  %v1206_v58 = vpack.c.bf16 %v1185_v56, %v1184_v55  ;;  %v1186_v59 = vld [vmem:[#allocation2 + $0x70] sm:$0xff]  ;;  %v1187_v60 = vld [vmem:[#allocation2 + $0xc0] sm:$0xff]  ;;  %v1188_v61 = vld [vmem:[#allocation2 + $0xa8] sm:$0xff] }
 0x208   : > { %3375 = vmatprep.subr.bf16.mxu1 %v3508_v23  ;;  %v1189_v62 = vld [vmem:[#allocation2 + $0xd0] sm:$0xff]  ;;  %v1207_v63 = vpack.c.bf16 %v1187_v60, %v1186_v59  ;;  %v1191_v3 = vld [vmem:[#allocation2 + $0x28] sm:$0xff]  ;;  %v1192_v4 = vld [vmem:[#allocation2 + $0xa0] sm:$0xff] }
 0x209   : > { %v1208_v0 = vpack.c.bf16 %v1189_v62, %v1188_v61  ;;  %v1190_v1 = vld [vmem:[#allocation2 + $0x10] sm:$0xff]  ;;  %v1193_v5 = vld [vmem:[#allocation2 + $0xf8] sm:$0xff]  ;;  %v1194_v8 = vld [vmem:[#allocation2 + $0x20] sm:$0xff] }
 0x20a   : > { %v1209_v6 = vpack.c.bf16 %v1191_v3, %v1190_v1  ;;  %v1210_v7 = vpack.c.bf16 %v1193_v5, %v1192_v4  ;;  %v1195_v9 = vld [vmem:[#allocation2 + $0x98] sm:$0xff]  ;;  %v3514_v12 = vld [vmem:[%s3707_s16 + $0x30] sm:$0xff]   ;;  %v3517_v13 = vld [vmem:[%s3707_s16 + $0x28] sm:$0xff]  }
 0x20b   : > { %3376 = vmatpush3.bf16.msra.mxu1 %v3508_v23  ;;  %v1211_v10 = vpack.c.bf16 %v1195_v9, %v1194_v8  ;;  %v3513_v11 = vld [vmem:[%s3707_s16 + $0x38] sm:$0xff]   ;;  %v3520_v14 = vld [vmem:[%s3707_s16 + $0x20] sm:$0xff]   ;;  %v3526_v16 = vld [vmem:[%s3707_s16 + $0x10] sm:$0xff]  }
 0x20c   : > { %3377 = vmatprep.subr.bf16.mxu1 %v3509_v26  ;;  %v3523_v15 = vld [vmem:[%s3707_s16 + $0x18] sm:$0xff]   ;;  %v3529_v17 = vld [vmem:[%s3707_s16 + $0x8] sm:$0xff]   ;;  %v3532_v19 = vld [vmem:[%s3707_s16] sm:$0xff]  }
 0x20d   : > { %v1604_v20 = vld [vmem:[#allocation4 + $0x80] sm:$0xff]  ;;  %v1605_v21 = vld [vmem:[#allocation4 + $0xc8] sm:$0xff]  ;;  %v1607_v18 = vld [vmem:[#allocation4 + $0x78] sm:$0xff] }
 0x20e   : > { %v1636_v22 = vpack.c.bf16 %v1605_v21, %v1604_v20  ;;  %v1606_v23 = vld [vmem:[#allocation4 + $0xe8] sm:$0xff]  ;;  %v4051_v33 = vld [vmem:[%s483_s28] ss:$0 sm:$0xff]  ;;  %v1613_v36 = vld [vmem:[#allocation4 + $0xb0] sm:$0xff] }
 0x20f   : > { %3378 = vmatpush3.bf16.msra.mxu1 %v3509_v26  ;;  %v1637_v24 = vpack.c.bf16 %v1607_v18, %v1606_v23  ;;  %v3539_v25 = vld [vmem:[%s4580_s2 + $0x4] ss:$8 sps:$4 sm:$0xff]   ;;  %v1614_v37 = vld [vmem:[#allocation4 + $0x38] sm:$0xff]  ;;  %v1620_v18 = vld [vmem:[#allocation4 + $0x10] sm:$0xff] }
 0x210   : > { %3379 = vmatprep.subr.bf16.mxu1 %v3510_v27  ;;  %2332 = vmatprep.mubr.bf16.mxu0 %v3539_v25  ;;  %v1608_v26 = vld [vmem:[#allocation4 + $0x8] sm:$0xff]  ;;  %v1615_v39 = vld [vmem:[#allocation4 + $0x40] sm:$0xff]  ;;  %v1618_v62 = vld [vmem:[#allocation4 + $0x18] sm:$0xff] }
 0x211   : > { %v1611_v30 = vld [vmem:[#allocation4 + $0xa8] sm:$0xff]  ;;  %v1616_v60 = vld [vmem:[#allocation4 + $0xe0] sm:$0xff]  ;;  %v1622_v25 = vld [vmem:[#allocation4 + $0x50] sm:$0xff] }
 0x212   : > { %v1617_v61 = vld [vmem:[#allocation4 + $0x60] sm:$0xff]  ;;  %v1619_v1 = vld [vmem:[#allocation4 + $0x68] sm:$0xff] }
 0x213   : > { %3380 = vmatpush3.bf16.msra.mxu1 %v3510_v27  ;;  %v1609_v27 = vld [vmem:[#allocation4 + $0x90] sm:$0xff]  ;;  %v1643_v5 = vpack.c.bf16 %v1619_v1, %v1618_v62 }
 0x214   : > { %3381 = vmatprep.subr.bf16.mxu1 %v3511_v28 }
 0x217   : > { %3382 = vmatpush3.bf16.msra.mxu1 %v3511_v28  ;;  %v1610_v28 = vld [vmem:[#allocation4 + $0x58] sm:$0xff] }
 0x218   : > { %3383 = vmatprep.subr.bf16.mxu1 %v3512_v29  ;;  %v1639_v31 = vpack.c.bf16 %v1611_v30, %v1610_v28  ;;  %v1623_v28 = vld [vmem:[#allocation4 + $0xa0] sm:$0xff] }
 0x21b   : > { %3384 = vmatpush3.bf16.msra.mxu1 %v3512_v29  ;;  %v1638_v29 = vpack.c.bf16 %v1609_v27, %v1608_v26 }
 0x21c   : > { %3417 = vmatprep.subr.bf16.mxu1 %v3513_v11 }
 0x21e   : > { %3386 = vmatmul.mubr.bf16.vlgmr.msra.gmra.mxu1 %v1197_v34 }
 0x21f   : > { %3389 = vmatprep.mubr.bf16.mxu1 %v1198_v35  ;;  %3418 = vmatpush3.bf16.msra.mxu1 %v3513_v11  ;;  %v1612_v35 = vld [vmem:[#allocation4 + $0xd0] sm:$0xff] }
 0x220   : > { %3419 = vmatprep.subr.bf16.mxu1 %v3514_v12  ;;  %v1640_v38 = vpack.c.bf16 %v1613_v36, %v1612_v35 }
 0x223   : > { %3420 = vmatpush3.bf16.msra.mxu1 %v3514_v12 }
 0x224   : > { %3421 = vmatprep.subr.bf16.mxu1 %v3517_v13 }
 0x226   : > { %3390 = vmatmul.mubr.bf16.gmra.mxu1 %v1199_v40 }
 0x227   : > { %3393 = vmatprep.mubr.bf16.mxu1 %v1200_v41  ;;  %3422 = vmatpush3.bf16.msra.mxu1 %v3517_v13  ;;  %v1641_v41 = vpack.c.bf16 %v1615_v39, %v1614_v37 }
 0x228   : > { %3423 = vmatprep.subr.bf16.mxu1 %v3520_v14 }
 0x22b   : > { %3424 = vmatpush3.bf16.msra.mxu1 %v3520_v14 }
 0x22c   : > { %3425 = vmatprep.subr.bf16.mxu1 %v3523_v15 }
 0x22e   : > { %3394 = vmatmul.mubr.bf16.gmra.mxu1 %v1201_v46 }
 0x22f   : > { %3397 = vmatprep.mubr.bf16.mxu1 %v1202_v47  ;;  %3426 = vmatpush3.bf16.msra.mxu1 %v3523_v15 }
 0x230   : > { %3427 = vmatprep.subr.bf16.mxu1 %v3526_v16 }
 0x233   : > { %3428 = vmatpush3.bf16.msra.mxu1 %v3526_v16 }
 0x234   : > { %3429 = vmatprep.subr.bf16.mxu1 %v3529_v17 }
 0x236   : > { %3398 = vmatmul.mubr.bf16.gmra.mxu1 %v1203_v2 }
 0x237   : > { %3401 = vmatprep.mubr.bf16.mxu1 %v1204_v52  ;;  %3430 = vmatpush3.bf16.msra.mxu1 %v3529_v17 }
 0x238   : > { %3431 = vmatprep.subr.bf16.mxu1 %v3532_v19 }
 0x23b   : > { %3432 = vmatpush3.bf16.msra.mxu1 %v3532_v19 }
 0x23e   : > { %3402 = vmatmul.mubr.bf16.gmra.mxu1 %v1205_v57 }
 0x23f   : > { %3405 = vmatprep.mubr.bf16.mxu1 %v1206_v58 }
 0x246   : > { %3406 = vmatmul.mubr.bf16.gmra.mxu1 %v1207_v63 }
 0x247   : > { %3409 = vmatprep.mubr.bf16.mxu1 %v1208_v0  ;;  %v1642_v0 = vpack.c.bf16 %v1617_v61, %v1616_v60 }
 0x24e   : > { %3410 = vmatmul.mubr.bf16.gmra.mxu1 %v1209_v6 }
 0x24f   : > { %3413 = vmatprep.mubr.bf16.mxu1 %v1210_v7 }
 0x256   : > { %3414 = vmatmul.mubr.bf16.gmra.mxu1 %v1211_v10 }
 0x257   : > { %3433 = vmatprep.mubr.bf16.mxu1 %v1636_v22 }
 0x25e   : > { %3434 = vmatmul.mubr.bf16.vlgmr.msra.gmra.mxu1 %v1637_v24  ;;  %v1621_v24 = vld [vmem:[#allocation4 + $0x70] sm:$0xff] }
 0x25f   : > { %3437 = vmatprep.mubr.bf16.mxu1 %v1638_v29  ;;  %v1644_v27 = vpack.c.bf16 %v1621_v24, %v1620_v18  ;;  %v1633_v18 = vld [vmem:[#allocation4] sm:$0xff]  ;;  %v1634_v24 = vld [vmem:[#allocation4 + $0x28] sm:$0xff] }
 0x266   : > { %3438 = vmatmul.mubr.bf16.gmra.mxu1 %v1639_v31  ;;  %v1645_v31 = vpack.c.bf16 %v1623_v28, %v1622_v25 }
 0x267   : > { %3441 = vmatprep.mubr.bf16.mxu1 %v1640_v38 }
 0x26e   : > { %3442 = vmatmul.mubr.bf16.gmra.mxu1 %v1641_v41 }
 0x26f   : > { %3445 = vmatprep.mubr.bf16.mxu1 %v1642_v0 }
 0x276   : > { %3446 = vmatmul.mubr.bf16.gmra.mxu1 %v1643_v5 }
 0x277   : > { %3449 = vmatprep.mubr.bf16.mxu1 %v1644_v27 }
 0x27e   : > { %3450 = vmatmul.mubr.bf16.gmra.mxu1 %v1645_v31 }
 0x2de   : > { %v3387_v32 = vpop.f32.mrf.mxu1 }
 0x2df   : > { %v1326_v42 = vadd.f32 %v3387_v32, %v4051_v33 }
 0x2e0   : > { %v1317_v34 = vpop.f32.mrf.mxu1 }
 0x2e1   : > { %v1318_v45 = vadd.f32 %v4051_v33, %v1317_v34 }
 0x2e2   : > { %v3388_v40 = vpop.f32.mrf.mxu1 }
 0x2e3   : > { %v1329_v43 = vadd.f32 %v3388_v40, %v4051_v33 }
 0x2e4   : > { %v1320_v44 = vpop.f32.mrf.mxu1 }
 0x2e5   : > { %v2978_v46 = vpack.c.bf16 %v1329_v43, %v1326_v42  ;;  %v1321_v47 = vadd.f32 %v4051_v33, %v1320_v44 }
 0x2e6   : > { %v3391_v48 = vpop.f32.mrf.mxu1 }
 0x2e7   : > { %3050 = vst [vmem:[#allocation3 + $0x8] sm:$0xff] %v2978_v46   ;;  %v2973_v49 = vpack.c.bf16 %v1321_v47, %v1318_v45  ;;  %v1342_v2 = vadd.f32 %v3391_v48, %v4051_v33 }
 0x2e8   : > { %v1333_v50 = vpop.f32.mrf.mxu1 }
 0x2e9   : > { %2974 = vst [vmem:[#allocation3] sm:$0xff] %v2973_v49   ;;  %v1334_v54 = vadd.f32 %v4051_v33, %v1333_v50  ;;  %v1624_v50 = vld [vmem:[#allocation4 + $0xd8] sm:$0xff] }
 0x2ea   : > { %v3392_v51 = vpop.f32.mrf.mxu1 }
 0x2eb   : > { %v1345_v52 = vadd.f32 %v3392_v51, %v4051_v33  ;;  %v1625_v51 = vld [vmem:[#allocation4 + $0x30] sm:$0xff] }
 0x2ec   : > { %v1336_v53 = vpop.f32.mrf.mxu1 }
 0x2ed   : > { %v2988_v55 = vpack.c.bf16 %v1345_v52, %v1342_v2  ;;  %v1337_v56 = vadd.f32 %v4051_v33, %v1336_v53  ;;  %v1626_v2 = vld [vmem:[#allocation4 + $0x20] sm:$0xff]  ;;  %v1646_v53 = vpack.c.bf16 %v1625_v51, %v1624_v50  ;;  %v3558_v51 = vld [vmem:[%s4580_s2 + $0x74] ss:$8 sps:$4 sm:$0xff]  }
 0x2ee   : > { %v3395_v57 = vpop.f32.mrf.mxu1  ;;  %v3557_v50 = vld [vmem:[%s4580_s2 + $0x60] ss:$8 sps:$4 sm:$0xff]  }
 0x2ef   : > { %3052 = vst [vmem:[#allocation3 + $0x18] sm:$0xff] %v2988_v55   ;;  %v2983_v58 = vpack.c.bf16 %v1337_v56, %v1334_v54  ;;  %v1358_v3 = vadd.f32 %v3395_v57, %v4051_v33  ;;  %v1627_v54 = vld [vmem:[#allocation4 + $0xf0] sm:$0xff]  ;;  %3453 = vmatprep.mubr.bf16.mxu1 %v1646_v53  ;;  %v3563_v53 = vld [vmem:[%s4580_s2 + $0x80] ss:$8 sps:$4 sm:$0xff]  }
 0x2f0   : > { %v1349_v59 = vpop.f32.mrf.mxu1  ;;  %v1647_v57 = vpack.c.bf16 %v1627_v54, %v1626_v2  ;;  %v3560_v2 = vld [vmem:[%s4580_s2 + $0x70] ss:$8 sps:$4 sm:$0xff]  }
 0x2f1   : > { %3051 = vst [vmem:[#allocation3 + $0x10] sm:$0xff] %v2983_v58   ;;  %v1350_v7 = vadd.f32 %v4051_v33, %v1349_v59 }
 0x2f2   : > { %v3396_v63 = vpop.f32.mrf.mxu1  ;;  %3454 = vmatmul.mubr.bf16.gmra.mxu1 %v1647_v57 }
 0x2f3   : > { %v1361_v4 = vadd.f32 %v3396_v63, %v4051_v33 }
 0x2f4   : > { %v1352_v6 = vpop.f32.mrf.mxu1 }
 0x2f5   : > { %v2998_v8 = vpack.c.bf16 %v1361_v4, %v1358_v3  ;;  %v1353_v9 = vadd.f32 %v4051_v33, %v1352_v6 }
 0x2f6   : > { %v3399_v10 = vpop.f32.mrf.mxu1 }
 0x2f7   : > { %3054 = vst [vmem:[#allocation3 + $0x28] sm:$0xff] %v2998_v8   ;;  %v2993_v11 = vpack.c.bf16 %v1353_v9, %v1350_v7  ;;  %v1374_v14 = vadd.f32 %v3399_v10, %v4051_v33  ;;  %v1628_v10 = vld [vmem:[#allocation4 + $0x88] sm:$0xff] }
 0x2f8   : > { %v1365_v12 = vpop.f32.mrf.mxu1 }
 0x2f9   : > { %3053 = vst [vmem:[#allocation3 + $0x20] sm:$0xff] %v2993_v11   ;;  %v1366_v17 = vadd.f32 %v4051_v33, %v1365_v12  ;;  %v1629_v11 = vld [vmem:[#allocation4 + $0x48] sm:$0xff]  ;;  %v1630_v12 = vld [vmem:[#allocation4 + $0xf8] sm:$0xff] }
 0x2fa   : > { %v3400_v13 = vpop.f32.mrf.mxu1 }
 0x2fb   : > { %v1377_v15 = vadd.f32 %v3400_v13, %v4051_v33  ;;  %v1648_v13 = vpack.c.bf16 %v1629_v11, %v1628_v10 }
 0x2fc   : > { %v1368_v16 = vpop.f32.mrf.mxu1 }
 0x2fd   : > { %v3008_v19 = vpack.c.bf16 %v1377_v15, %v1374_v14  ;;  %v1369_v20 = vadd.f32 %v4051_v33, %v1368_v16  ;;  %v1631_v14 = vld [vmem:[#allocation4 + $0xc0] sm:$0xff]  ;;  %3457 = vmatprep.mubr.bf16.mxu1 %v1648_v13 }
 0x2fe   : > { %v3403_v21 = vpop.f32.mrf.mxu1  ;;  %v1649_v15 = vpack.c.bf16 %v1631_v14, %v1630_v12 }
 0x2ff   : > { %3056 = vst [vmem:[#allocation3 + $0x38] sm:$0xff] %v3008_v19   ;;  %v3003_v22 = vpack.c.bf16 %v1369_v20, %v1366_v17  ;;  %v1390_v29 = vadd.f32 %v3403_v21, %v4051_v33 }
 0x300   : > { %v1381_v23 = vpop.f32.mrf.mxu1  ;;  %3458 = vmatmul.mubr.bf16.gmra.mxu1 %v1649_v15  ;;  %v3525_v28 = vld [vmem:[#allocation3 + $0x20] sm:$0xff]  }
 0x301   : > { %3055 = vst [vmem:[#allocation3 + $0x30] sm:$0xff] %v3003_v22   ;;  %v1382_v34 = vadd.f32 %v4051_v33, %v1381_v23  ;;  %v1632_v23 = vld [vmem:[#allocation4 + $0xb8] sm:$0xff]  ;;  %v3575_v15 = vld [vmem:[%s4580_s2 + $0xc0] ss:$8 sps:$4 sm:$0xff]  }
 0x302   : > { %v3404_v26 = vpop.f32.mrf.mxu1  ;;  %v1650_v25 = vpack.c.bf16 %v1633_v18, %v1632_v23 }
 0x303   : > { %v1393_v30 = vadd.f32 %v3404_v26, %v4051_v33  ;;  %v1635_v26 = vld [vmem:[#allocation4 + $0x98] sm:$0xff] }
 0x304   : > { %v1384_v32 = vpop.f32.mrf.mxu1  ;;  %v1651_v27 = vpack.c.bf16 %v1635_v26, %v1634_v24  ;;  %3461 = vmatprep.mubr.bf16.mxu1 %v1650_v25  ;;  %v3581_v26 = vld [vmem:[%s4580_s2 + $0xe0] ss:$8 sps:$4 sm:$0xff]  }
 0x305   : > { %v3018_v35 = vpack.c.bf16 %v1393_v30, %v1390_v29  ;;  %v1385_v36 = vadd.f32 %v4051_v33, %v1384_v32  ;;  %v3528_v30 = vld [vmem:[#allocation3 + $0x18] sm:$0xff]   ;;  %v3531_v32 = vld [vmem:[#allocation3 + $0x10] sm:$0xff]  }
 0x306   : > { %v3407_v37 = vpop.f32.mrf.mxu1  ;;  %v3516_v17 = vld [vmem:[#allocation3 + $0x38] sm:$0xff]  }
 0x307   : > { %3058 = vst [vmem:[#allocation3 + $0x48] sm:$0xff] %v3018_v35   ;;  %v3013_v38 = vpack.c.bf16 %v1385_v36, %v1382_v34  ;;  %v1406_v41 = vadd.f32 %v3407_v37, %v4051_v33  ;;  %v3534_v35 = vld [vmem:[#allocation3 + $0x8] sm:$0xff]   ;;  %v3536_v37 = vld [vmem:[#allocation3] sm:$0xff]  }
 0x308   : > { %v1397_v39 = vpop.f32.mrf.mxu1  ;;  %v3519_v20 = vld [vmem:[#allocation3 + $0x30] sm:$0xff]   ;;  %3462 = vmatmul.mubr.bf16.gmra.mxu1 %v1651_v27 }
 0x309   : > { %3057 = vst [vmem:[#allocation3 + $0x40] sm:$0xff] %v3013_v38   ;;  %v1398_v44 = vadd.f32 %v4051_v33, %v1397_v39  ;;  %v3537_v38 = vld [vmem:[%s4580_s2] ss:$8 sps:$4 sm:$0xff]   ;;  %v3540_v39 = vld [vmem:[%s4580_s2 + $0x14] ss:$8 sps:$4 sm:$0xff]  }
 0x30a   : > { %v3408_v40 = vpop.f32.mrf.mxu1  ;;  %v3582_v27 = vld [vmem:[%s4580_s2 + $0xf4] ss:$8 sps:$4 sm:$0xff]  }
 0x30b   : > { %v1409_v42 = vadd.f32 %v3408_v40, %v4051_v33  ;;  %v3542_v40 = vld [vmem:[%s4580_s2 + $0x10] ss:$8 sps:$4 sm:$0xff]  }
 0x30c   : > { %v1400_v43 = vpop.f32.mrf.mxu1 }
 0x30d   : > { %v3028_v45 = vpack.c.bf16 %v1409_v42, %v1406_v41  ;;  %v1401_v46 = vadd.f32 %v4051_v33, %v1400_v43  ;;  %v3543_v41 = vld [vmem:[%s4580_s2 + $0x24] ss:$8 sps:$4 sm:$0xff]   ;;  %v3545_v42 = vld [vmem:[%s4580_s2 + $0x20] ss:$8 sps:$4 sm:$0xff]   ;;  %v3546_v43 = vld [vmem:[%s4580_s2 + $0x34] ss:$8 sps:$4 sm:$0xff]  }
 0x30e   : > { %v3411_v47 = vpop.f32.mrf.mxu1  ;;  %v3533_v34 = vld [vmem:[#allocation3 + $0x48] sm:$0xff]  }
 0x30f   : > { %3060 = vst [vmem:[#allocation3 + $0x58] sm:$0xff] %v3028_v45   ;;  %v3023_v48 = vpack.c.bf16 %v1401_v46, %v1398_v44  ;;  %v1422_v55 = vadd.f32 %v3411_v47, %v4051_v33  ;;  %v3548_v44 = vld [vmem:[%s4580_s2 + $0x30] ss:$8 sps:$4 sm:$0xff]   ;;  %v3549_v45 = vld [vmem:[%s4580_s2 + $0x44] ss:$8 sps:$4 sm:$0xff]  }
 0x310   : > { %v1413_v49 = vpop.f32.mrf.mxu1  ;;  %v3535_v36 = vld [vmem:[#allocation3 + $0x40] sm:$0xff]   ;;  %v3552_v47 = vld [vmem:[%s4580_s2 + $0x54] ss:$8 sps:$4 sm:$0xff]  }
 0x311   : > { %3059 = vst [vmem:[#allocation3 + $0x50] sm:$0xff] %v3023_v48   ;;  %v1414_v59 = vadd.f32 %v4051_v33, %v1413_v49  ;;  %v3551_v46 = vld [vmem:[%s4580_s2 + $0x40] ss:$8 sps:$4 sm:$0xff]   ;;  %v3554_v48 = vld [vmem:[%s4580_s2 + $0x50] ss:$8 sps:$4 sm:$0xff]  }
 0x312   : > { %v3412_v52 = vpop.f32.mrf.mxu1  ;;  %v3555_v49 = vld [vmem:[%s4580_s2 + $0x64] ss:$8 sps:$4 sm:$0xff]  }
 0x313   : > { %v1425_v56 = vadd.f32 %v3412_v52, %v4051_v33  ;;  %v3561_v52 = vld [vmem:[%s4580_s2 + $0x84] ss:$8 sps:$4 sm:$0xff]  }
 0x314   : > { %v1416_v58 = vpop.f32.mrf.mxu1 }
 0x315   : > { %v3038_v60 = vpack.c.bf16 %v1425_v56, %v1422_v55  ;;  %v1417_v61 = vadd.f32 %v4051_v33, %v1416_v58  ;;  %v4141_v55 = vld [vmem:[%s4592_s18] ss:$0 sm:$0xff]  ;;  %v3564_v56 = vld [vmem:[%s4580_s2 + $0x94] ss:$8 sps:$4 sm:$0xff]  }
 0x316   : > { %v3415_v62 = vpop.f32.mrf.mxu1  ;;  %v3527_v29 = vld [vmem:[#allocation3 + $0x58] sm:$0xff]  }
 0x317   : > { %3062 = vst [vmem:[#allocation3 + $0x68] sm:$0xff] %v3038_v60   ;;  %v3033_v63 = vpack.c.bf16 %v1417_v61, %v1414_v59  ;;  %v1438_v3 = vadd.f32 %v3415_v62, %v4051_v33 }
 0x318   : > { %v1429_v0 = vpop.f32.mrf.mxu1  ;;  %v3530_v31 = vld [vmem:[#allocation3 + $0x50] sm:$0xff]  }
 0x319   : > { %3061 = vst [vmem:[#allocation3 + $0x60] sm:$0xff] %v3033_v63   ;;  %v1430_v6 = vadd.f32 %v4051_v33, %v1429_v0  ;;  %v3566_v0 = vld [vmem:[%s4580_s2 + $0x90] ss:$8 sps:$4 sm:$0xff]  }
 0x31a   : > { %v3416_v1 = vpop.f32.mrf.mxu1 }
 0x31b   : > { %v1441_v4 = vadd.f32 %v3416_v1, %v4051_v33  ;;  %v3567_v1 = vld [vmem:[%s4580_s2 + $0xa4] ss:$8 sps:$4 sm:$0xff]  }
 0x31c   : > { %v1432_v5 = vpop.f32.mrf.mxu1 }
 0x31d   : > { %v3048_v7 = vpack.c.bf16 %v1441_v4, %v1438_v3  ;;  %v1433_v8 = vadd.f32 %v4051_v33, %v1432_v5  ;;  %v3522_v33 = vld [vmem:[#allocation3 + $0x28] sm:$0xff]   ;;  %v3570_v4 = vld [vmem:[%s4580_s2 + $0xb4] ss:$8 sps:$4 sm:$0xff]  }
 0x31e   : > { %v3521_v21 = vld [vmem:[#allocation3 + $0x68] sm:$0xff]   ;;  %v3435_v54 = vpop.f32.mrf.mxu1 }
 0x31f   : > { %3064 = vst [vmem:[#allocation3 + $0x78] sm:$0xff] %v3048_v7   ;;  %v3043_v9 = vpack.c.bf16 %v1433_v8, %v1430_v6  ;;  %v4147_v57 = vadd.f32 %v3435_v54, %v4141_v55  ;;  %v3569_v3 = vld [vmem:[%s4580_s2 + $0xa0] ss:$8 sps:$4 sm:$0xff]   ;;  %v3572_v7 = vld [vmem:[%s4580_s2 + $0xb0] ss:$8 sps:$4 sm:$0xff]  }
 0x320   : > { %v3524_v22 = vld [vmem:[#allocation3 + $0x60] sm:$0xff]   ;;  %v1757_v58 = vpop.f32.mrf.mxu1 }
 0x321   : > { %3063 = vst [vmem:[#allocation3 + $0x70] sm:$0xff] %v3043_v9   ;;  %1886 = vst [vmem:[#allocation4 + $0xe8] sm:$0xff] %v4147_v57  ;;  %v4155_v59 = vadd.f32 %v4141_v55, %v1757_v58  ;;  %v3573_v9 = vld [vmem:[%s4580_s2 + $0xc4] ss:$8 sps:$4 sm:$0xff]  }
 0x322   : > { %1950 = vst [vmem:[%s4590_s12 + $0x10] sm:$0xff] %v4147_v57  ;;  %v3436_v60 = vpop.f32.mrf.mxu1 }
 0x323   : > { %1884 = vst [vmem:[#allocation4 + $0x80] sm:$0xff] %v4155_v59  ;;  %1948 = vst [vmem:[%s4590_s12] sm:$0xff] %v4155_v59  ;;  %v4163_v61 = vadd.f32 %v3436_v60, %v4141_v55 }
 0x324   : > { %v1760_v62 = vpop.f32.mrf.mxu1 }
 0x325   : > { %1887 = vst [vmem:[#allocation4 + $0x78] sm:$0xff] %v4163_v61  ;;  %1951 = vst [vmem:[%s4590_s12 + $0x18] sm:$0xff] %v4163_v61  ;;  %v4171_v63 = vadd.f32 %v4141_v55, %v1760_v62 }
 0x326   : > { %v3515_v16 = vld [vmem:[#allocation3 + $0x78] sm:$0xff]   ;;  %v3439_v5 = vpop.f32.mrf.mxu1 }
 0x327   : > { %3161 = vmatprep.subr.bf16.mxu0 %v3515_v16  ;;  %1885 = vst [vmem:[#allocation4 + $0xc8] sm:$0xff] %v4171_v63  ;;  %1949 = vst [vmem:[%s4590_s12 + $0x8] sm:$0xff] %v4171_v63  ;;  %v4191_v6 = vadd.f32 %v3439_v5, %v4141_v55  ;;  %v3576_v16 = vld [vmem:[%s4580_s2 + $0xd4] ss:$8 sps:$4 sm:$0xff]  }
 0x328   : > { %v3518_v19 = vld [vmem:[#allocation3 + $0x70] sm:$0xff]   ;;  %3162 = vmatpush3.bf16.msra.mxu0 %v3516_v17  ;;  %v1773_v8 = vpop.f32.mrf.mxu1 }
 0x329   : > { %3163 = vmatprep.subr.bf16.mxu0 %v3518_v19  ;;  %1890 = vst [vmem:[#allocation4 + $0x58] sm:$0xff] %v4191_v6  ;;  %1954 = vst [vmem:[%s4590_s12 + $0x30] sm:$0xff] %v4191_v6  ;;  %v4205_v10 = vadd.f32 %v4141_v55, %v1773_v8 }
 0x32a   : > { %v3440_v11 = vpop.f32.mrf.mxu1 }
 0x32b   : > { %1888 = vst [vmem:[#allocation4 + $0x8] sm:$0xff] %v4205_v10  ;;  %1952 = vst [vmem:[%s4590_s12 + $0x20] sm:$0xff] %v4205_v10  ;;  %v4213_v12 = vadd.f32 %v3440_v11, %v4141_v55 }
 0x32c   : > { %3164 = vmatpush3.bf16.msra.mxu0 %v3519_v20  ;;  %v1776_v13 = vpop.f32.mrf.mxu1  ;;  %v3578_v20 = vld [vmem:[%s4580_s2 + $0xd0] ss:$8 sps:$4 sm:$0xff]  }
 0x32d   : > { %3165 = vmatprep.subr.bf16.mxu0 %v3521_v21  ;;  %1891 = vst [vmem:[#allocation4 + $0xa8] sm:$0xff] %v4213_v12  ;;  %1955 = vst [vmem:[%s4590_s12 + $0x38] sm:$0xff] %v4213_v12  ;;  %v4221_v14 = vadd.f32 %v4141_v55, %v1776_v13 }
 0x32e   : > { %v3443_v17 = vpop.f32.mrf.mxu1 }
 0x32f   : > { %1889 = vst [vmem:[#allocation4 + $0x90] sm:$0xff] %v4221_v14  ;;  %1953 = vst [vmem:[%s4590_s12 + $0x28] sm:$0xff] %v4221_v14  ;;  %v4235_v19 = vadd.f32 %v3443_v17, %v4141_v55 }
 0x330   : > { %3166 = vmatpush3.bf16.msra.mxu0 %v3522_v33  ;;  %v1789_v21 = vpop.f32.mrf.mxu1  ;;  %v3579_v33 = vld [vmem:[%s4580_s2 + $0xe4] ss:$8 sps:$4 sm:$0xff]  }
 0x331   : > { %3167 = vmatprep.subr.bf16.mxu0 %v3524_v22  ;;  %1894 = vst [vmem:[#allocation4 + $0x38] sm:$0xff] %v4235_v19  ;;  %1958 = vst [vmem:[%s4590_s12 + $0x50] sm:$0xff] %v4235_v19  ;;  %v4249_v22 = vadd.f32 %v4141_v55, %v1789_v21 }
 0x332   : > { %v3444_v23 = vpop.f32.mrf.mxu1 }
 0x333   : > { %1892 = vst [vmem:[#allocation4 + $0xd0] sm:$0xff] %v4249_v22  ;;  %1956 = vst [vmem:[%s4590_s12 + $0x40] sm:$0xff] %v4249_v22  ;;  %v4257_v18 = vadd.f32 %v3444_v23, %v4141_v55 }
 0x334   : > { %3168 = vmatpush3.bf16.msra.mxu0 %v3525_v28  ;;  %v1792_v24 = vpop.f32.mrf.mxu1 }
 0x335   : > { %3169 = vmatprep.subr.bf16.mxu0 %v3527_v29  ;;  %1895 = vst [vmem:[#allocation4 + $0x40] sm:$0xff] %v4257_v18  ;;  %1959 = vst [vmem:[%s4590_s12 + $0x58] sm:$0xff] %v4257_v18  ;;  %v4265_v25 = vadd.f32 %v4141_v55, %v1792_v24 }
 0x336   : > { %v3447_v28 = vpop.f32.mrf.mxu1 }
 0x337   : > { %1893 = vst [vmem:[#allocation4 + $0xb0] sm:$0xff] %v4265_v25  ;;  %1957 = vst [vmem:[%s4590_s12 + $0x48] sm:$0xff] %v4265_v25  ;;  %v4279_v29 = vadd.f32 %v3447_v28, %v4141_v55 }
 0x338   : > { %3170 = vmatpush3.bf16.msra.mxu0 %v3528_v30  ;;  %v3584_v30 = vld [vmem:[%s4580_s2 + $0xf0] ss:$8 sps:$4 sm:$0xff]  }
 0x339   : > { %3171 = vmatprep.subr.bf16.mxu0 %v3530_v31  ;;  %1898 = vst [vmem:[#allocation4 + $0x18] sm:$0xff] %v4279_v29  ;;  %1962 = vst [vmem:[%s4590_s12 + $0x70] sm:$0xff] %v4279_v29  ;;  %v1805_v31 = vpop.f32.mrf.mxu1 }
 0x33c   : > { %3172 = vmatpush3.bf16.msra.mxu0 %v3531_v32  ;;  %v4290_v32 = vadd.f32 %v4141_v55, %v1805_v31 }
 0x33d   : > { %3173 = vmatprep.subr.bf16.mxu0 %v3533_v34  ;;  %v3448_v34 = vpop.f32.mrf.mxu1 }
 0x33e   : > { %1896 = vst [vmem:[#allocation4 + $0xe0] sm:$0xff] %v4290_v32  ;;  %1960 = vst [vmem:[%s4590_s12 + $0x60] sm:$0xff] %v4290_v32 }
 0x340   : > { %3174 = vmatpush3.bf16.msra.mxu0 %v3534_v35  ;;  %v4298_v35 = vadd.f32 %v3448_v34, %v4141_v55 }
 0x341   : > { %3175 = vmatprep.subr.bf16.mxu0 %v3535_v36  ;;  %v1808_v36 = vpop.f32.mrf.mxu1 }
 0x342   : > { %1899 = vst [vmem:[#allocation4 + $0x68] sm:$0xff] %v4298_v35  ;;  %1963 = vst [vmem:[%s4590_s12 + $0x78] sm:$0xff] %v4298_v35 }
 0x344   : > { %3176 = vmatpush3.bf16.msra.mxu0 %v3536_v37  ;;  %v4306_v37 = vadd.f32 %v4141_v55, %v1808_v36 }
 0x346   : > { %1897 = vst [vmem:[#allocation4 + $0x60] sm:$0xff] %v4306_v37  ;;  %1961 = vst [vmem:[%s4590_s12 + $0x68] sm:$0xff] %v4306_v37 }
 0x347   : > { %2333 = vmatmul.mubr.bf16.vlgmr.msra.gmra.mxu0 %v3537_v38  ;;  %v3451_v38 = vpop.f32.mrf.mxu1 }
 0x348   : > { %2340 = vmatprep.mubr.bf16.mxu0 %v3540_v39  ;;  %v4314_v39 = vadd.f32 %v3451_v38, %v4141_v55 }
 0x34a   : > { %1902 = vst [vmem:[#allocation4 + $0x50] sm:$0xff] %v4314_v39  ;;  %1966 = vst [vmem:[%s4590_s12 + $0x90] sm:$0xff] %v4314_v39 }
 0x34f   : > { %2341 = vmatmul.mubr.bf16.gmra.mxu0 %v3542_v40  ;;  %v1821_v40 = vpop.f32.mrf.mxu1 }
 0x350   : > { %2348 = vmatprep.mubr.bf16.mxu0 %v3543_v41  ;;  %v4322_v41 = vadd.f32 %v4141_v55, %v1821_v40 }
 0x352   : > { %1900 = vst [vmem:[#allocation4 + $0x10] sm:$0xff] %v4322_v41  ;;  %1964 = vst [vmem:[%s4590_s12 + $0x80] sm:$0xff] %v4322_v41 }
 0x357   : > { %2349 = vmatmul.mubr.bf16.gmra.mxu0 %v3545_v42  ;;  %v3452_v42 = vpop.f32.mrf.mxu1 }
 0x358   : > { %2356 = vmatprep.mubr.bf16.mxu0 %v3546_v43  ;;  %v4330_v43 = vadd.f32 %v3452_v42, %v4141_v55 }
 0x35a   : > { %1903 = vst [vmem:[#allocation4 + $0xa0] sm:$0xff] %v4330_v43  ;;  %1967 = vst [vmem:[%s4590_s12 + $0x98] sm:$0xff] %v4330_v43 }
 0x35f   : > { %2357 = vmatmul.mubr.bf16.gmra.mxu0 %v3548_v44  ;;  %v1824_v44 = vpop.f32.mrf.mxu1 }
 0x360   : > { %2364 = vmatprep.mubr.bf16.mxu0 %v3549_v45  ;;  %v4338_v45 = vadd.f32 %v4141_v55, %v1824_v44 }
 0x362   : > { %1901 = vst [vmem:[#allocation4 + $0x70] sm:$0xff] %v4338_v45  ;;  %1965 = vst [vmem:[%s4590_s12 + $0x88] sm:$0xff] %v4338_v45 }
 0x367   : > { %2365 = vmatmul.mubr.bf16.gmra.mxu0 %v3551_v46 }
 0x368   : > { %2372 = vmatprep.mubr.bf16.mxu0 %v3552_v47 }
 0x36f   : > { %2373 = vmatmul.mubr.bf16.gmra.mxu0 %v3554_v48 }
 0x370   : > { %2380 = vmatprep.mubr.bf16.mxu0 %v3555_v49 }
 0x377   : > { %2381 = vmatmul.mubr.bf16.gmra.mxu0 %v3557_v50 }
 0x378   : > { %2388 = vmatprep.mubr.bf16.mxu0 %v3558_v51 }
 0x37f   : > { %2389 = vmatmul.mubr.bf16.gmra.mxu0 %v3560_v2 }
 0x380   : > { %2396 = vmatprep.mubr.bf16.mxu0 %v3561_v52 }
 0x387   : > { %2397 = vmatmul.mubr.bf16.gmra.mxu0 %v3563_v53 }
 0x388   : > { %2404 = vmatprep.mubr.bf16.mxu0 %v3564_v56 }
 0x38f   : > { %2405 = vmatmul.mubr.bf16.gmra.mxu0 %v3566_v0 }
 0x390   : > { %2412 = vmatprep.mubr.bf16.mxu0 %v3567_v1 }
 0x397   : > { %2413 = vmatmul.mubr.bf16.gmra.mxu0 %v3569_v3 }
 0x398   : > { %2420 = vmatprep.mubr.bf16.mxu0 %v3570_v4 }
 0x39f   : > { %2421 = vmatmul.mubr.bf16.gmra.mxu0 %v3572_v7 }
 0x3a0   : > { %2428 = vmatprep.mubr.bf16.mxu0 %v3573_v9 }
 0x3a7   : > { %2429 = vmatmul.mubr.bf16.gmra.mxu0 %v3575_v15 }
 0x3a8   : > { %2436 = vmatprep.mubr.bf16.mxu0 %v3576_v16 }
 0x3af   : > { %2437 = vmatmul.mubr.bf16.gmra.mxu0 %v3578_v20 }
 0x3b0   : > { %2444 = vmatprep.mubr.bf16.mxu0 %v3579_v33 }
 0x3b2   : > { %v3455_v46 = vpop.f32.mrf.mxu1 }
 0x3b3   : > { %v4346_v47 = vadd.f32 %v3455_v46, %v4141_v55 }
 0x3b4   : > { %v1837_v48 = vpop.f32.mrf.mxu1 }
 0x3b5   : > { %1906 = vst [vmem:[#allocation4 + $0x20] sm:$0xff] %v4346_v47  ;;  %1970 = vst [vmem:[%s4590_s12 + $0xb0] sm:$0xff] %v4346_v47  ;;  %v4354_v49 = vadd.f32 %v4141_v55, %v1837_v48 }
 0x3b6   : > { %v3456_v50 = vpop.f32.mrf.mxu1 }
 0x3b7   : > { %2445 = vmatmul.mubr.bf16.gmra.mxu0 %v3581_v26  ;;  %1904 = vst [vmem:[#allocation4 + $0xd8] sm:$0xff] %v4354_v49  ;;  %1968 = vst [vmem:[%s4590_s12 + $0xa0] sm:$0xff] %v4354_v49  ;;  %v4362_v51 = vadd.f32 %v3456_v50, %v4141_v55 }
 0x3b8   : > { %2452 = vmatprep.mubr.bf16.mxu0 %v3582_v27  ;;  %v1840_v2 = vpop.f32.mrf.mxu1 }
 0x3b9   : > { %1907 = vst [vmem:[#allocation4 + $0xf0] sm:$0xff] %v4362_v51  ;;  %1971 = vst [vmem:[%s4590_s12 + $0xb8] sm:$0xff] %v4362_v51  ;;  %v4370_v52 = vadd.f32 %v4141_v55, %v1840_v2 }
 0x3bb   : > { %1905 = vst [vmem:[#allocation4 + $0x30] sm:$0xff] %v4370_v52  ;;  %1969 = vst [vmem:[%s4590_s12 + $0xa8] sm:$0xff] %v4370_v52 }
 0x3bf   : > { %2453 = vmatmul.mubr.bf16.gmra.mxu0 %v3584_v30 }
 0x3c0   : > { %v3459_v53 = vpop.f32.mrf.mxu1 }
 0x3c1   : > { %v4378_v54 = vadd.f32 %v3459_v53, %v4141_v55 }
 0x3c2   : > { %v1853_v56 = vpop.f32.mrf.mxu1 }
 0x3c3   : > { %1910 = vst [vmem:[#allocation4 + $0xf8] sm:$0xff] %v4378_v54  ;;  %1974 = vst [vmem:[%s4590_s12 + $0xd0] sm:$0xff] %v4378_v54  ;;  %v4386_v58 = vadd.f32 %v4141_v55, %v1853_v56 }
 0x3c4   : > { %v3460_v60 = vpop.f32.mrf.mxu1 }
 0x3c5   : > { %1908 = vst [vmem:[#allocation4 + $0x88] sm:$0xff] %v4386_v58  ;;  %1972 = vst [vmem:[%s4590_s12 + $0xc0] sm:$0xff] %v4386_v58  ;;  %v4394_v62 = vadd.f32 %v3460_v60, %v4141_v55 }
 0x3c6   : > { %v1856_v0 = vpop.f32.mrf.mxu1 }
 0x3c7   : > { %1911 = vst [vmem:[#allocation4 + $0xc0] sm:$0xff] %v4394_v62  ;;  %1975 = vst [vmem:[%s4590_s12 + $0xd8] sm:$0xff] %v4394_v62  ;;  %v4402_v1 = vadd.f32 %v4141_v55, %v1856_v0 }
 0x3c8   : > { %v3463_v3 = vpop.f32.mrf.mxu1 }
 0x3c9   : > { %1909 = vst [vmem:[#allocation4 + $0x48] sm:$0xff] %v4402_v1  ;;  %1973 = vst [vmem:[%s4590_s12 + $0xc8] sm:$0xff] %v4402_v1  ;;  %v4410_v4 = vadd.f32 %v3463_v3, %v4141_v55 }
 0x3ca   : > { %v1869_v5 = vpop.f32.mrf.mxu1 }
 0x3cb   : > { %1914 = vst [vmem:[#allocation4 + $0x28] sm:$0xff] %v4410_v4  ;;  %1978 = vst [vmem:[%s4590_s12 + $0xf0] sm:$0xff] %v4410_v4  ;;  %v4418_v7 = vadd.f32 %v4141_v55, %v1869_v5 }
 0x3cc   : > { %v3464_v8 = vpop.f32.mrf.mxu1 }
 0x3cd   : > { %1912 = vst [vmem:[#allocation4 + $0xb8] sm:$0xff] %v4418_v7  ;;  %1976 = vst [vmem:[%s4590_s12 + $0xe0] sm:$0xff] %v4418_v7  ;;  %v4426_v9 = vadd.f32 %v3464_v8, %v4141_v55 }
 0x3ce   : > { %v1872_v11 = vpop.f32.mrf.mxu1 }
 0x3cf   : > { %1915 = vst [vmem:[#allocation4 + $0x98] sm:$0xff] %v4426_v9  ;;  %1979 = vst [vmem:[%s4590_s12 + $0xf8] sm:$0xff] %v4426_v9  ;;  %v4434_v13 = vadd.f32 %v4141_v55, %v1872_v11 }
 0x3d1   : > { %1913 = vst [vmem:[#allocation4] sm:$0xff] %v4434_v13  ;;  %1977 = vst [vmem:[%s4590_s12 + $0xe8] sm:$0xff] %v4434_v13 }
 0x407   : > { %v3177_v15 = vpop.f32.mrf.mxu0 }
 0x409   : > { %v3178_v16 = vpop.f32.mrf.mxu0 }
 0x40a   : > { %v3179_v17 = vadd.f32 %v3178_v16, %v3177_v15 }
 0x40b   : > { %v3180_v20 = vpop.f32.mrf.mxu0 }
 0x40c   : > { %v2461_v21 = vmax.f32 %v3179_v17, 0.0 }
 0x40d   : > { %v3181_v33 = vpop.f32.mrf.mxu0 }
 0x40e   : > { %v2527_v23 = vmul.f32 %v2461_v21, %v4155_v59  ;;  %v3182_v24 = vadd.f32 %v3181_v33, %v3180_v20 }
 0x40f   : > { %v3183_v26 = vpop.f32.mrf.mxu0 }
 0x410   : > { %v2559_v27 = vadd.f32 %v2527_v23, %v2461_v21  ;;  %v2462_v55 = vmax.f32 %v3182_v24, 0.0 }
 0x411   : > { %v3184_v28 = vpop.f32.mrf.mxu0 }
 0x412   : > { %v2591_v30 = vmax.f32 %v2559_v27, 0.0  ;;  %v2528_v31 = vmul.f32 %v2462_v55, %v4171_v63  ;;  %v3185_v34 = vadd.f32 %v3184_v28, %v3183_v26 }
 0x413   : > { %v3186_v36 = vpop.f32.mrf.mxu0 }
 0x414   : > { %2623 = vst [vmem:[%s4589_s11] sm:$0xff] %v2591_v30  ;;  %2656 = vst [vmem:[#allocation2 + $0xb0] sm:$0xff] %v2591_v30  ;;  %v2560_v38 = vadd.f32 %v2528_v31, %v2462_v55  ;;  %v2463_v40 = vmax.f32 %v3185_v34, 0.0 }
 0x415   : > { %v3187_v42 = vpop.f32.mrf.mxu0 }
 0x416   : > { %v2592_v44 = vmax.f32 %v2560_v38, 0.0  ;;  %v2529_v59 = vmul.f32 %v2463_v40, %v4147_v57  ;;  %v3188_v46 = vadd.f32 %v3187_v42, %v3186_v36 }
 0x417   : > { %v3189_v48 = vpop.f32.mrf.mxu0 }
 0x418   : > { %2624 = vst [vmem:[%s4589_s11 + $0x8] sm:$0xff] %v2592_v44  ;;  %2657 = vst [vmem:[#allocation2] sm:$0xff] %v2592_v44  ;;  %v2561_v63 = vadd.f32 %v2529_v59, %v2463_v40  ;;  %v2464_v50 = vmax.f32 %v3188_v46, 0.0 }
 0x419   : > { %v3190_v2 = vpop.f32.mrf.mxu0 }
 0x41a   : > { %v2593_v53 = vmax.f32 %v2561_v63, 0.0  ;;  %v2530_v56 = vmul.f32 %v2464_v50, %v4163_v61  ;;  %v3191_v60 = vadd.f32 %v3190_v2, %v3189_v48 }
 0x41b   : > { %v3192_v0 = vpop.f32.mrf.mxu0 }
 0x41c   : > { %2625 = vst [vmem:[%s4589_s11 + $0x10] sm:$0xff] %v2593_v53  ;;  %2658 = vst [vmem:[#allocation2 + $0xd8] sm:$0xff] %v2593_v53  ;;  %v2562_v57 = vadd.f32 %v2530_v56, %v2464_v50  ;;  %v2465_v3 = vmax.f32 %v3191_v60, 0.0 }
 0x41d   : > { %v3193_v5 = vpop.f32.mrf.mxu0 }
 0x41e   : > { %v2594_v8 = vmax.f32 %v2562_v57, 0.0  ;;  %v2531_v11 = vmul.f32 %v2465_v3, %v4205_v10  ;;  %v3194_v15 = vadd.f32 %v3193_v5, %v3192_v0 }
 0x41f   : > { %v3195_v16 = vpop.f32.mrf.mxu0 }
 0x420   : > { %2626 = vst [vmem:[%s4589_s11 + $0x18] sm:$0xff] %v2594_v8  ;;  %2659 = vst [vmem:[#allocation2 + $0x18] sm:$0xff] %v2594_v8  ;;  %v2563_v61 = vadd.f32 %v2531_v11, %v2465_v3  ;;  %v2466_v17 = vmax.f32 %v3194_v15, 0.0 }
 0x421   : > { %v3196_v20 = vpop.f32.mrf.mxu0 }
 0x422   : > { %v2595_v21 = vmax.f32 %v2563_v61, 0.0  ;;  %v2532_v33 = vmul.f32 %v2466_v17, %v4221_v14  ;;  %v3197_v23 = vadd.f32 %v3196_v20, %v3195_v16 }
 0x423   : > { %v3198_v24 = vpop.f32.mrf.mxu0 }
 0x424   : > { %2627 = vst [vmem:[%s4589_s11 + $0x20] sm:$0xff] %v2595_v21  ;;  %2660 = vst [vmem:[#allocation2 + $0x50] sm:$0xff] %v2595_v21  ;;  %v2564_v10 = vadd.f32 %v2532_v33, %v2466_v17  ;;  %v2467_v26 = vmax.f32 %v3197_v23, 0.0 }
 0x425   : > { %v3199_v27 = vpop.f32.mrf.mxu0 }
 0x426   : > { %v2596_v55 = vmax.f32 %v2564_v10, 0.0  ;;  %v2533_v28 = vmul.f32 %v2467_v26, %v4191_v6  ;;  %v3200_v30 = vadd.f32 %v3199_v27, %v3198_v24 }
 0x427   : > { %v3201_v31 = vpop.f32.mrf.mxu0 }
 0x428   : > { %2628 = vst [vmem:[%s4589_s11 + $0x28] sm:$0xff] %v2596_v55  ;;  %2661 = vst [vmem:[#allocation2 + $0x68] sm:$0xff] %v2596_v55  ;;  %v2565_v14 = vadd.f32 %v2533_v28, %v2467_v26  ;;  %v2468_v34 = vmax.f32 %v3200_v30, 0.0 }
 0x429   : > { %v3202_v36 = vpop.f32.mrf.mxu0 }
 0x42a   : > { %v2597_v38 = vmax.f32 %v2565_v14, 0.0  ;;  %v2534_v40 = vmul.f32 %v2468_v34, %v4213_v12  ;;  %v3203_v42 = vadd.f32 %v3202_v36, %v3201_v31 }
 0x42b   : > { %v3204_v44 = vpop.f32.mrf.mxu0 }
 0x42c   : > { %2629 = vst [vmem:[%s4589_s11 + $0x30] sm:$0xff] %v2597_v38  ;;  %2662 = vst [vmem:[#allocation2 + $0x30] sm:$0xff] %v2597_v38  ;;  %v2566_v6 = vadd.f32 %v2534_v40, %v2468_v34  ;;  %v2469_v59 = vmax.f32 %v3203_v42, 0.0 }
 0x42d   : > { %v3205_v46 = vpop.f32.mrf.mxu0 }
 0x42e   : > { %v2598_v48 = vmax.f32 %v2566_v6, 0.0  ;;  %v2535_v63 = vmul.f32 %v2469_v59, %v4249_v22  ;;  %v3206_v50 = vadd.f32 %v3205_v46, %v3204_v44 }
 0x42f   : > { %v3207_v2 = vpop.f32.mrf.mxu0 }
 0x430   : > { %2630 = vst [vmem:[%s4589_s11 + $0x38] sm:$0xff] %v2598_v48  ;;  %2663 = vst [vmem:[#allocation2 + $0x48] sm:$0xff] %v2598_v48  ;;  %v2567_v12 = vadd.f32 %v2535_v63, %v2469_v59  ;;  %v2470_v53 = vmax.f32 %v3206_v50, 0.0 }
 0x431   : > { %v3208_v56 = vpop.f32.mrf.mxu0 }
 0x432   : > { %v2599_v60 = vmax.f32 %v2567_v12, 0.0  ;;  %v2536_v0 = vmul.f32 %v2470_v53, %v4265_v25  ;;  %v3209_v57 = vadd.f32 %v3208_v56, %v3207_v2 }
 0x433   : > { %v3210_v3 = vpop.f32.mrf.mxu0 }
 0x434   : > { %2631 = vst [vmem:[%s4589_s11 + $0x40] sm:$0xff] %v2599_v60  ;;  %2664 = vst [vmem:[#allocation2 + $0x80] sm:$0xff] %v2599_v60  ;;  %v2568_v22 = vadd.f32 %v2536_v0, %v2470_v53  ;;  %v2471_v5 = vmax.f32 %v3209_v57, 0.0 }
 0x435   : > { %v3211_v8 = vpop.f32.mrf.mxu0 }
 0x436   : > { %v2600_v11 = vmax.f32 %v2568_v22, 0.0  ;;  %v2537_v15 = vmul.f32 %v2471_v5, %v4235_v19  ;;  %v3212_v16 = vadd.f32 %v3211_v8, %v3210_v3 }
 0x437   : > { %v3213_v61 = vpop.f32.mrf.mxu0 }
 0x438   : > { %2632 = vst [vmem:[%s4589_s11 + $0x48] sm:$0xff] %v2600_v11  ;;  %2665 = vst [vmem:[#allocation2 + $0x88] sm:$0xff] %v2600_v11  ;;  %v2569_v25 = vadd.f32 %v2537_v15, %v2471_v5  ;;  %v2472_v17 = vmax.f32 %v3212_v16, 0.0 }
 0x439   : > { %v3214_v20 = vpop.f32.mrf.mxu0 }
 0x43a   : > { %v2601_v21 = vmax.f32 %v2569_v25, 0.0  ;;  %v2538_v33 = vmul.f32 %v2472_v17, %v4257_v18  ;;  %v3215_v23 = vadd.f32 %v3214_v20, %v3213_v61 }
 0x43b   : > { %v3216_v24 = vpop.f32.mrf.mxu0 }
 0x43c   : > { %2633 = vst [vmem:[%s4589_s11 + $0x50] sm:$0xff] %v2601_v21  ;;  %2666 = vst [vmem:[#allocation2 + $0xe8] sm:$0xff] %v2601_v21  ;;  %v2570_v19 = vadd.f32 %v2538_v33, %v2472_v17  ;;  %v2473_v10 = vmax.f32 %v3215_v23, 0.0 }
 0x43d   : > { %v3217_v26 = vpop.f32.mrf.mxu0 }
 0x43e   : > { %v2602_v27 = vmax.f32 %v2570_v19, 0.0  ;;  %v2539_v55 = vmul.f32 %v2473_v10, %v4290_v32  ;;  %v3218_v28 = vadd.f32 %v3217_v26, %v3216_v24 }
 0x43f   : > { %v3219_v30 = vpop.f32.mrf.mxu0 }
 0x440   : > { %2634 = vst [vmem:[%s4589_s11 + $0x58] sm:$0xff] %v2602_v27  ;;  %2667 = vst [vmem:[#allocation2 + $0xb8] sm:$0xff] %v2602_v27  ;;  %v2571_v18 = vadd.f32 %v2539_v55, %v2473_v10  ;;  %v2474_v31 = vmax.f32 %v3218_v28, 0.0 }
 0x441   : > { %v3220_v14 = vpop.f32.mrf.mxu0 }
 0x442   : > { %v2603_v34 = vmax.f32 %v2571_v18, 0.0  ;;  %v2540_v36 = vmul.f32 %v2474_v31, %v4306_v37  ;;  %v3221_v38 = vadd.f32 %v3220_v14, %v3219_v30 }
 0x443   : > { %v3222_v40 = vpop.f32.mrf.mxu0 }
 0x444   : > { %2635 = vst [vmem:[%s4589_s11 + $0x60] sm:$0xff] %v2603_v34  ;;  %2668 = vst [vmem:[#allocation2 + $0x60] sm:$0xff] %v2603_v34  ;;  %v2572_v32 = vadd.f32 %v2540_v36, %v2474_v31  ;;  %v2475_v42 = vmax.f32 %v3221_v38, 0.0 }
 0x445   : > { %v3223_v44 = vpop.f32.mrf.mxu0 }
 0x446   : > { %v2604_v6 = vmax.f32 %v2572_v32, 0.0  ;;  %v2541_v59 = vmul.f32 %v2475_v42, %v4279_v29  ;;  %v3224_v46 = vadd.f32 %v3223_v44, %v3222_v40 }
 0x447   : > { %v3225_v48 = vpop.f32.mrf.mxu0 }
 0x448   : > { %2636 = vst [vmem:[%s4589_s11 + $0x68] sm:$0xff] %v2604_v6  ;;  %2669 = vst [vmem:[#allocation2 + $0xf0] sm:$0xff] %v2604_v6  ;;  %v2573_v37 = vadd.f32 %v2541_v59, %v2475_v42  ;;  %v2476_v63 = vmax.f32 %v3224_v46, 0.0 }
 0x449   : > { %v3226_v50 = vpop.f32.mrf.mxu0 }
 0x44a   : > { %v2605_v2 = vmax.f32 %v2573_v37, 0.0  ;;  %v2542_v12 = vmul.f32 %v2476_v63, %v4298_v35  ;;  %v3227_v53 = vadd.f32 %v3226_v50, %v3225_v48 }
 0x44b   : > { %v3228_v56 = vpop.f32.mrf.mxu0 }
 0x44c   : > { %2637 = vst [vmem:[%s4589_s11 + $0x70] sm:$0xff] %v2605_v2  ;;  %2670 = vst [vmem:[#allocation2 + $0x8] sm:$0xff] %v2605_v2  ;;  %v2574_v29 = vadd.f32 %v2542_v12, %v2476_v63  ;;  %v2477_v60 = vmax.f32 %v3227_v53, 0.0 }
 0x44d   : > { %v3229_v0 = vpop.f32.mrf.mxu0 }
 0x44e   : > { %v2606_v57 = vmax.f32 %v2574_v29, 0.0  ;;  %v2543_v3 = vmul.f32 %v2477_v60, %v4322_v41  ;;  %v3230_v22 = vadd.f32 %v3229_v0, %v3228_v56 }
 0x44f   : > { %v3231_v5 = vpop.f32.mrf.mxu0 }
 0x450   : > { %2638 = vst [vmem:[%s4589_s11 + $0x78] sm:$0xff] %v2606_v57  ;;  %2671 = vst [vmem:[#allocation2 + $0x78] sm:$0xff] %v2606_v57  ;;  %v2575_v35 = vadd.f32 %v2543_v3, %v2477_v60  ;;  %v2478_v8 = vmax.f32 %v3230_v22, 0.0 }
 0x451   : > { %v3232_v11 = vpop.f32.mrf.mxu0 }
 0x452   : > { %v2607_v15 = vmax.f32 %v2575_v35, 0.0  ;;  %v2544_v16 = vmul.f32 %v2478_v8, %v4338_v45  ;;  %v3233_v61 = vadd.f32 %v3232_v11, %v3231_v5 }
 0x453   : > { %v3234_v25 = vpop.f32.mrf.mxu0 }
 0x454   : > { %2639 = vst [vmem:[%s4589_s11 + $0x80] sm:$0xff] %v2607_v15  ;;  %2672 = vst [vmem:[#allocation2 + $0x38] sm:$0xff] %v2607_v15  ;;  %v2576_v41 = vadd.f32 %v2544_v16, %v2478_v8  ;;  %v2479_v17 = vmax.f32 %v3233_v61, 0.0 }
 0x455   : > { %v3235_v20 = vpop.f32.mrf.mxu0 }
 0x456   : > { %v2608_v21 = vmax.f32 %v2576_v41, 0.0  ;;  %v2545_v33 = vmul.f32 %v2479_v17, %v4314_v39  ;;  %v3236_v23 = vadd.f32 %v3235_v20, %v3234_v25 }
 0x457   : > { %v3237_v24 = vpop.f32.mrf.mxu0 }
 0x458   : > { %2640 = vst [vmem:[%s4589_s11 + $0x88] sm:$0xff] %v2608_v21  ;;  %2673 = vst [vmem:[#allocation2 + $0x58] sm:$0xff] %v2608_v21  ;;  %v2577_v45 = vadd.f32 %v2545_v33, %v2479_v17  ;;  %v2480_v19 = vmax.f32 %v3236_v23, 0.0 }
 0x459   : > { %v3238_v10 = vpop.f32.mrf.mxu0 }
 0x45a   : > { %v2609_v26 = vmax.f32 %v2577_v45, 0.0  ;;  %v2546_v27 = vmul.f32 %v2480_v19, %v4330_v43  ;;  %v3239_v55 = vadd.f32 %v3238_v10, %v3237_v24 }
 0x45b   : > { %v3240_v28 = vpop.f32.mrf.mxu0 }
 0x45c   : > { %2641 = vst [vmem:[%s4589_s11 + $0x90] sm:$0xff] %v2609_v26  ;;  %2674 = vst [vmem:[#allocation2 + $0x40] sm:$0xff] %v2609_v26  ;;  %v2578_v39 = vadd.f32 %v2546_v27, %v2480_v19  ;;  %v2481_v30 = vmax.f32 %v3239_v55, 0.0 }
 0x45d   : > { %v3241_v18 = vpop.f32.mrf.mxu0 }
 0x45e   : > { %v2610_v31 = vmax.f32 %v2578_v39, 0.0  ;;  %v2547_v14 = vmul.f32 %v2481_v30, %v4354_v49  ;;  %v3242_v34 = vadd.f32 %v3241_v18, %v3240_v28 }
 0x45f   : > { %v3243_v36 = vpop.f32.mrf.mxu0 }
 0x460   : > { %2642 = vst [vmem:[%s4589_s11 + $0x98] sm:$0xff] %v2610_v31  ;;  %2675 = vst [vmem:[#allocation2 + $0xc8] sm:$0xff] %v2610_v31  ;;  %v2579_v43 = vadd.f32 %v2547_v14, %v2481_v30  ;;  %v2482_v38 = vmax.f32 %v3242_v34, 0.0 }
 0x461   : > { %v3244_v40 = vpop.f32.mrf.mxu0 }
 0x462   : > { %v2611_v32 = vmax.f32 %v2579_v43, 0.0  ;;  %v2548_v42 = vmul.f32 %v2482_v38, %v4370_v52  ;;  %v3245_v44 = vadd.f32 %v3244_v40, %v3243_v36 }
 0x463   : > { %v3246_v6 = vpop.f32.mrf.mxu0 }
 0x464   : > { %2643 = vst [vmem:[%s4589_s11 + $0xa0] sm:$0xff] %v2611_v32  ;;  %2676 = vst [vmem:[#allocation2 + $0xe0] sm:$0xff] %v2611_v32  ;;  %v2580_v49 = vadd.f32 %v2548_v42, %v2482_v38  ;;  %v2483_v59 = vmax.f32 %v3245_v44, 0.0 }
 0x465   : > { %v3247_v46 = vpop.f32.mrf.mxu0 }
 0x466   : > { %v2612_v48 = vmax.f32 %v2580_v49, 0.0  ;;  %v2549_v37 = vmul.f32 %v2483_v59, %v4346_v47  ;;  %v3248_v63 = vadd.f32 %v3247_v46, %v3246_v6 }
 0x467   : > { %v3249_v50 = vpop.f32.mrf.mxu0 }
 0x468   : > { %2644 = vst [vmem:[%s4589_s11 + $0xa8] sm:$0xff] %v2612_v48  ;;  %2677 = vst [vmem:[#allocation2 + $0x90] sm:$0xff] %v2612_v48  ;;  %v2581_v52 = vadd.f32 %v2549_v37, %v2483_v59  ;;  %v2484_v2 = vmax.f32 %v3248_v63, 0.0 }
 0x469   : > { %v3250_v12 = vpop.f32.mrf.mxu0 }
 0x46a   : > { %v2613_v53 = vmax.f32 %v2581_v52, 0.0  ;;  %v2550_v56 = vmul.f32 %v2484_v2, %v4362_v51  ;;  %v3251_v29 = vadd.f32 %v3250_v12, %v3249_v50 }
 0x46b   : > { %v3252_v60 = vpop.f32.mrf.mxu0 }
 0x46c   : > { %2645 = vst [vmem:[%s4589_s11 + $0xb0] sm:$0xff] %v2613_v53  ;;  %2678 = vst [vmem:[#allocation2 + $0x70] sm:$0xff] %v2613_v53  ;;  %v2582_v47 = vadd.f32 %v2550_v56, %v2484_v2  ;;  %v2485_v0 = vmax.f32 %v3251_v29, 0.0 }
 0x46d   : > { %v3253_v57 = vpop.f32.mrf.mxu0 }
 0x46e   : > { %v2614_v3 = vmax.f32 %v2582_v47, 0.0  ;;  %v2551_v22 = vmul.f32 %v2485_v0, %v4386_v58  ;;  %v3254_v5 = vadd.f32 %v3253_v57, %v3252_v60 }
 0x46f   : > { %v3255_v35 = vpop.f32.mrf.mxu0 }
 0x470   : > { %2646 = vst [vmem:[%s4589_s11 + $0xb8] sm:$0xff] %v2614_v3  ;;  %2679 = vst [vmem:[#allocation2 + $0xc0] sm:$0xff] %v2614_v3  ;;  %v2583_v51 = vadd.f32 %v2551_v22, %v2485_v0  ;;  %v2486_v8 = vmax.f32 %v3254_v5, 0.0 }
 0x471   : > { %v3256_v11 = vpop.f32.mrf.mxu0 }
 0x472   : > { %v2615_v15 = vmax.f32 %v2583_v51, 0.0  ;;  %v2552_v16 = vmul.f32 %v2486_v8, %v4402_v1  ;;  %v3257_v61 = vadd.f32 %v3256_v11, %v3255_v35 }
 0x473   : > { %v3258_v25 = vpop.f32.mrf.mxu0 }
 0x474   : > { %2647 = vst [vmem:[%s4589_s11 + $0xc0] sm:$0xff] %v2615_v15  ;;  %2680 = vst [vmem:[#allocation2 + $0xa8] sm:$0xff] %v2615_v15  ;;  %v2584_v58 = vadd.f32 %v2552_v16, %v2486_v8  ;;  %v2487_v41 = vmax.f32 %v3257_v61, 0.0 }
 0x475   : > { %v3259_v17 = vpop.f32.mrf.mxu0 }
 0x476   : > { %v2616_v20 = vmax.f32 %v2584_v58, 0.0  ;;  %v2553_v21 = vmul.f32 %v2487_v41, %v4378_v54  ;;  %v3260_v33 = vadd.f32 %v3259_v17, %v3258_v25 }
 0x477   : > { %v3261_v23 = vpop.f32.mrf.mxu0 }
 0x478   : > { %2648 = vst [vmem:[%s4589_s11 + $0xc8] sm:$0xff] %v2616_v20  ;;  %2681 = vst [vmem:[#allocation2 + $0xd0] sm:$0xff] %v2616_v20  ;;  %v2585_v1 = vadd.f32 %v2553_v21, %v2487_v41  ;;  %v2488_v24 = vmax.f32 %v3260_v33, 0.0 }
 0x479   : > { %v3262_v45 = vpop.f32.mrf.mxu0 }
 0x47a   : > { %v2617_v19 = vmax.f32 %v2585_v1, 0.0  ;;  %v2554_v10 = vmul.f32 %v2488_v24, %v4394_v62  ;;  %v3263_v26 = vadd.f32 %v3262_v45, %v3261_v23 }
 0x47b   : > { %v3264_v27 = vpop.f32.mrf.mxu0 }
 0x47c   : > { %2649 = vst [vmem:[%s4589_s11 + $0xd0] sm:$0xff] %v2617_v19  ;;  %2682 = vst [vmem:[#allocation2 + $0x10] sm:$0xff] %v2617_v19  ;;  %v2586_v54 = vadd.f32 %v2554_v10, %v2488_v24  ;;  %v2489_v55 = vmax.f32 %v3263_v26, 0.0 }
 0x47d   : > { %v3265_v28 = vpop.f32.mrf.mxu0 }
 0x47e   : > { %v2618_v39 = vmax.f32 %v2586_v54, 0.0  ;;  %v2555_v30 = vmul.f32 %v2489_v55, %v4418_v7  ;;  %v3266_v18 = vadd.f32 %v3265_v28, %v3264_v27 }
 0x47f   : > { %v3267_v31 = vpop.f32.mrf.mxu0 }
 0x480   : > { %2650 = vst [vmem:[%s4589_s11 + $0xd8] sm:$0xff] %v2618_v39  ;;  %2683 = vst [vmem:[#allocation2 + $0x28] sm:$0xff] %v2618_v39  ;;  %v2587_v62 = vadd.f32 %v2555_v30, %v2489_v55  ;;  %v2490_v14 = vmax.f32 %v3266_v18, 0.0 }
 0x481   : > { %v3268_v34 = vpop.f32.mrf.mxu0 }
 0x482   : > { %v2619_v36 = vmax.f32 %v2587_v62, 0.0  ;;  %v2556_v43 = vmul.f32 %v2490_v14, %v4434_v13  ;;  %v3269_v38 = vadd.f32 %v3268_v34, %v3267_v31 }
 0x483   : > { %v3270_v40 = vpop.f32.mrf.mxu0 }
 0x484   : > { %2651 = vst [vmem:[%s4589_s11 + $0xe0] sm:$0xff] %v2619_v36  ;;  %2684 = vst [vmem:[#allocation2 + $0xa0] sm:$0xff] %v2619_v36  ;;  %v2588_v7 = vadd.f32 %v2556_v43, %v2490_v14  ;;  %v2491_v32 = vmax.f32 %v3269_v38, 0.0 }
 0x485   : > { %v3271_v42 = vpop.f32.mrf.mxu0 }
 0x486   : > { %v2620_v44 = vmax.f32 %v2588_v7, 0.0  ;;  %v2557_v6 = vmul.f32 %v2491_v32, %v4410_v4  ;;  %v3272_v49 = vadd.f32 %v3271_v42, %v3270_v40 }
 0x488   : > { %2652 = vst [vmem:[%s4589_s11 + $0xe8] sm:$0xff] %v2620_v44  ;;  %2685 = vst [vmem:[#allocation2 + $0xf8] sm:$0xff] %v2620_v44  ;;  %v2589_v13 = vadd.f32 %v2557_v6, %v2491_v32  ;;  %v2492_v59 = vmax.f32 %v3272_v49, 0.0 }
 0x48a   : > { %v2621_v46 = vmax.f32 %v2589_v13, 0.0  ;;  %v2558_v48 = vmul.f32 %v2492_v59, %v4426_v9 }
 0x48c   : > { %2653 = vst [vmem:[%s4589_s11 + $0xf0] sm:$0xff] %v2621_v46  ;;  %2686 = vst [vmem:[#allocation2 + $0x20] sm:$0xff] %v2621_v46  ;;  %v2590_v37 = vadd.f32 %v2558_v48, %v2492_v59 }
 0x48e   : > { %v2622_v63 = vmax.f32 %v2590_v37, 0.0 }
 0x490   : > { %2654 = vst [vmem:[%s4589_s11 + $0xf8] sm:$0xff] %v2622_v63  ;;  %2687 = vst [vmem:[#allocation2 + $0x98] sm:$0xff] %v2622_v63 }
 0x491 PF: > { %s23_s23 = sadd.s32 1, %s3607_s23   ;;  %s4593_s15 = sld [smem:[#allocation5_spill]] }
 0x492   : > { %p20_p6 = scmp.ge.s32.totalorder %s23_s23, 5   ;;  %s4594_s21 = smov %s3603_s22 }
 0x494   :  { %22 = sbr.rel (!%p20_p6) target bundleno = 2 (0x2), region = 124 }
 0x497   : > { %s4595_s22 = smov %s4593_s15 }

</bundles_post_ra>
